<compile_context>
chip_gen: v7x
topology: tpu7x:2x2x1
jax: 0.10.0
libtpu: 0.0.40
codegen_flags: <defaults>
</compile_context>

<pallas_src>
import functools

import jax
import jax.numpy as jnp
import numpy as np
from jax.experimental import pallas as pl
from jax.experimental.pallas import tpu as pltpu


def _tsp_kernel(x_ref, diff_ref,
                wa_ref, ba_ref,          # fused [fc1*bn1 | skip-linear] weight/bias
                w2_ref, b2_ref,          # fc2 with bn2 folded in
                w3_ref, b3_ref,          # fc3
                out_ref, hidden_ref,
                *, n_day, h1_dim, strategy, compute_dtype):
    # One MXU pass over x for both fc1 and the skip linear, then split columns.
    x = x_ref[...]                                                        # (TB, E)
    ha = jnp.dot(x, wa_ref[...], preferred_element_type=jnp.float32) + ba_ref[...]
    h = jnp.maximum(ha[:, :h1_dim], 0.0)      # fc1 + folded BN1 + ReLU (Dropout=id)
    x_orig = ha[:, h1_dim:]                   # skip branch: self.linear(x)

    h = jnp.dot(h.astype(compute_dtype), w2_ref[...],
                preferred_element_type=jnp.float32) + b2_ref[...]
    h = jnp.maximum(h, 0.0)                   # fc2 + folded BN2 + ReLU
    h = jnp.dot(h.astype(compute_dtype), w3_ref[...],
                preferred_element_type=jnp.float32) + b3_ref[...]

    hidden = h + x_orig                       # (TB, n_day) f32
    hidden_ref[...] = hidden.astype(hidden_ref.dtype)

    # Gather hidden[row, diff] (+ clamped neighbours for 'smooth') with one fused
    # count-mask and a single cross-lane reduction.
    idx = diff_ref[...]                                                   # (TB, 1)
    iota = jax.lax.broadcasted_iota(jnp.int32, hidden.shape, 1)           # (TB, n_day)
    wmask = (iota == idx).astype(jnp.float32)
    if strategy == "smooth":
        idx_m = jnp.maximum(idx - 1, 0)                 # clamp; edge counted twice
        idx_p = jnp.minimum(idx + 1, n_day - 1)         # (matches the reference)
        wmask = (wmask
                 + (iota == idx_m).astype(jnp.float32)
                 + (iota == idx_p).astype(jnp.float32))
    out = jnp.sum(wmask * hidden, axis=1, keepdims=True)                  # (TB, 1)
    if strategy == "smooth":
        out = out / 3.0
    out_ref[...] = jax.nn.sigmoid(out).astype(out_ref.dtype)


def time_sens_perceptron(x, diff, params, *, n_day, strategy="smooth",
                         tile_b=128, compute_dtype=jnp.bfloat16):
    """x: (B, E), diff: (B,) int32. Returns (out (B,1) f32, hidden (B,n_day) f32)."""
    B, E = x.shape

    # Batch tile: multiple of 8 sublanes; pad B up so any batch size works.
    tb = min(tile_b, B)
    tb = ((tb + 7) // 8) * 8
    Bp = pl.cdiv(B, tb) * tb
    if Bp != B:
        x = jnp.pad(x, ((0, Bp - B), (0, 0)))
        diff = jnp.pad(diff, (0, Bp - B))

    (wlin, blin, w1, b1, s1, t1, w2, b2, s2, t2, w3, b3) = params
    H1, H2 = w1.shape[1], w2.shape[1]

    # Fold eval-mode BatchNorm into the adjacent Linear (exact up to fp rounding).
    w1f = w1 * s1
    b1f = b1 * s1 + t1
    w2f = w2 * s2
    b2f = b2 * s2 + t2

    # Fuse fc1 and the skip linear so x goes through the MXU once.
    wa = jnp.concatenate([w1f, wlin], axis=1).astype(compute_dtype)   # (E, H1+n_day)
    ba = jnp.concatenate([b1f, blin], axis=1).astype(jnp.float32)     # (1, H1+n_day)
    w2c = w2f.astype(compute_dtype)
    b2c = b2f.astype(jnp.float32)
    w3c = w3.astype(compute_dtype)
    b3c = b3.astype(jnp.float32)

    x_c = x.astype(compute_dtype)
    diff2 = diff.reshape(Bp, 1).astype(jnp.int32)

    kernel = functools.partial(_tsp_kernel, n_day=n_day, h1_dim=H1,
                               strategy=strategy, compute_dtype=compute_dtype)

    full = lambda shape: pl.BlockSpec(shape, lambda i: (0, 0))  # VMEM-resident weights
    grid_spec = pltpu.PrefetchScalarGridSpec(
        num_scalar_prefetch=0,
        grid=(Bp // tb,),
        in_specs=[
            pl.BlockSpec((tb, E), lambda i: (i, 0)),          # x tile
            pl.BlockSpec((tb, 1), lambda i: (i, 0)),          # diff tile
            full((E, H1 + n_day)), full((1, H1 + n_day)),     # fused fc1|skip
            full((H1, H2)), full((1, H2)),                    # fc2 (BN folded)
            full((H2, n_day)), full((1, n_day)),              # fc3
        ],
        out_specs=[
            pl.BlockSpec((tb, 1), lambda i: (i, 0)),          # out (tiny tensor)
            pl.BlockSpec((tb, n_day), lambda i: (i, 0)),      # hidden
        ],
    )

    out, hidden = pl.pallas_call(
        kernel,
        out_shape=(jax.ShapeDtypeStruct((Bp, 1), jnp.float32),
                   jax.ShapeDtypeStruct((Bp, n_day), jnp.float32)),
        grid_spec=grid_spec,
        compiler_params=pltpu.CompilerParams(dimension_semantics=("parallel",)),
    )(x_c, diff2, wa, ba, w2c, b2c, w3c, b3c)

    if Bp != B:
        out, hidden = out[:B], hidden[:B]
    return out, hidden


def init_params(key, embed_dim, n_day, hidden_dim=(64, 32), eps=1e-5):
    """Deterministic parameter init. Weights stored pre-transposed (in, out)."""
    H1, H2 = hidden_dim
    ks = jax.random.split(key, 16)
    u = lambda k, shape, s: jax.random.uniform(k, shape, jnp.float32, -s, s)

    wlin = u(ks[0], (embed_dim, n_day), 0.3)
    blin = u(ks[1], (1, n_day), 0.3)
    w1 = u(ks[2], (embed_dim, H1), 0.3)
    b1 = u(ks[3], (1, H1), 0.3)
    w2 = u(ks[4], (H1, H2), 0.3)
    b2 = u(ks[5], (1, H2), 0.3)
    w3 = u(ks[6], (H2, n_day), 0.3)
    b3 = u(ks[7], (1, n_day), 0.3)

    # BatchNorm1d params + running stats (eval mode) -> per-feature scale/shift.
    def fold_bn(kg, kb, km, kv, dim):
        gamma = 1.0 + 0.1 * jax.random.normal(kg, (1, dim), jnp.float32)
        beta = 0.1 * jax.random.normal(kb, (1, dim), jnp.float32)
        mean = 0.1 * jax.random.normal(km, (1, dim), jnp.float32)
        var = jnp.abs(1.0 + 0.1 * jax.random.normal(kv, (1, dim), jnp.float32))
        scale = gamma / jnp.sqrt(var + eps)
        shift = beta - mean * scale
        return scale, shift

    s1, t1 = fold_bn(ks[8], ks[9], ks[10], ks[11], H1)
    s2, t2 = fold_bn(ks[12], ks[13], ks[14], ks[15], H2)

    return (wlin, blin, w1, b1, s1, t1, w2, b2, s2, t2, w3, b3)


def reference(x, diff, params, *, n_day, strategy="smooth"):
    """Pure-JAX reference mirroring the PyTorch module (eval mode)."""
    (wlin, blin, w1, b1, s1, t1, w2, b2, s2, t2, w3, b3) = params
    x_orig = x @ wlin + blin
    h = jnp.maximum((x @ w1 + b1) * s1 + t1, 0.0)
    h = jnp.maximum((h @ w2 + b2) * s2 + t2, 0.0)
    hidden = (h @ w3 + b3) + x_orig
    B = x.shape[0]
    out = hidden[jnp.arange(B), diff]
    if strategy == "smooth":
        dm = jnp.where(diff - 1 == -1, 0, diff - 1)
        dp = jnp.where(diff + 1 == n_day, n_day - 1, diff + 1)
        out = (out + hidden[jnp.arange(B), dm] + hidden[jnp.arange(B), dp]) / 3.0
    out = jax.nn.sigmoid(out)
    return out.reshape(-1, 1), hidden


if __name__ == "__main__":
    B, embed_dim, n_day = 256, 32, 8      # tile_b=128 -> 2 parallel grid steps
    strategy = "smooth"

    key = jax.random.PRNGKey(0)
    kx, kd, kp = jax.random.split(key, 3)
    x = jax.random.normal(kx, (B, embed_dim), jnp.float32)
    diff = jax.random.randint(kd, (B,), 0, n_day, jnp.int32)
    params = init_params(kp, embed_dim, n_day)

    out_ref_, hidden_ref_ = reference(x, diff, params, n_day=n_day, strategy=strategy)

    # f32 compute path: checks the fused / BN-folded math tightly.
    out32, hid32 = time_sens_perceptron(x, diff, params, n_day=n_day,
                                        strategy=strategy, tile_b=128,
                                        compute_dtype=jnp.float32)
    jax.block_until_ready((out32, hid32))
    np.testing.assert_allclose(np.asarray(hid32), np.asarray(hidden_ref_),
                               rtol=1e-4, atol=1e-4)
    np.testing.assert_allclose(np.asarray(out32), np.asarray(out_ref_),
                               rtol=1e-4, atol=1e-4)

    # bf16 MXU-input path (v6e/v7x fast path), f32 accumulation.
    out16, hid16 = time_sens_perceptron(x, diff, params, n_day=n_day,
                                        strategy=strategy, tile_b=128,
                                        compute_dtype=jnp.bfloat16)
    jax.block_until_ready((out16, hid16))
    np.testing.assert_allclose(np.asarray(hid16), np.asarray(hidden_ref_),
                               rtol=1e-1, atol=1e-1)
    np.testing.assert_allclose(np.asarray(out16), np.asarray(out_ref_),
                               rtol=1e-1, atol=1e-1)

    # Non-multiple batch (exercises the padding path).
    outp, hidp = time_sens_perceptron(x[:100], diff[:100], params, n_day=n_day,
                                      strategy=strategy, tile_b=128,
                                      compute_dtype=jnp.float32)
    jax.block_until_ready((outp, hidp))
    np.testing.assert_allclose(np.asarray(hidp), np.asarray(hidden_ref_[:100]),
                               rtol=1e-4, atol=1e-4)
    np.testing.assert_allclose(np.asarray(outp), np.asarray(out_ref_[:100]),
                               rtol=1e-4, atol=1e-4)

    assert out32.shape == (B, 1) and hid32.shape == (B, n_day)
    print("KERNEL_OK")
</pallas_src>

<mosaic_0001>
module attributes {stable_mosaic.version = 11 : i64} {
  func.func @_tsp_kernel(%arg0: i32, %arg1: memref<128x32xf32, #tpu.memory_space<vmem>>, %arg2: memref<128x1xi32, #tpu.memory_space<vmem>>, %arg3: memref<32x72xf32, #tpu.memory_space<vmem>>, %arg4: memref<1x72xf32, #tpu.memory_space<vmem>>, %arg5: memref<64x32xf32, #tpu.memory_space<vmem>>, %arg6: memref<1x32xf32, #tpu.memory_space<vmem>>, %arg7: memref<32x8xf32, #tpu.memory_space<vmem>>, %arg8: memref<1x8xf32, #tpu.memory_space<vmem>>, %arg9: memref<128x1xf32, #tpu.memory_space<vmem>>, %arg10: memref<128x8xf32, #tpu.memory_space<vmem>>) attributes {dimension_semantics = [#tpu.dimension_semantics<parallel>], iteration_bounds = array<i64: 2>, scalar_prefetch = 0 : i64, scratch_operands = 0 : i64, tpu.core_type = #tpu.core_type<tc>, window_params = [{transform_indices = @transform_0, window_bounds = array<i64: 128, 32>}, {transform_indices = @transform_1, window_bounds = array<i64: 128, 1>}, {pipeline_mode = #tpu.pipeline_mode<synchronous>, transform_indices = @transform_2, window_bounds = array<i64: 32, 72>}, {pipeline_mode = #tpu.pipeline_mode<synchronous>, transform_indices = @transform_3, window_bounds = array<i64: 1, 72>}, {pipeline_mode = #tpu.pipeline_mode<synchronous>, transform_indices = @transform_4, window_bounds = array<i64: 64, 32>}, {pipeline_mode = #tpu.pipeline_mode<synchronous>, transform_indices = @transform_5, window_bounds = array<i64: 1, 32>}, {pipeline_mode = #tpu.pipeline_mode<synchronous>, transform_indices = @transform_6, window_bounds = array<i64: 32, 8>}, {pipeline_mode = #tpu.pipeline_mode<synchronous>, transform_indices = @transform_7, window_bounds = array<i64: 1, 8>}, {transform_indices = @transform_8, window_bounds = array<i64: 128, 1>}, {transform_indices = @transform_9, window_bounds = array<i64: 128, 8>}]} {
    %c0 = arith.constant 0 : index
    %c0_0 = arith.constant 0 : index
    %0 = vector.load %arg1[%c0, %c0_0] : memref<128x32xf32, #tpu.memory_space<vmem>>, vector<128x32xf32>
    %c0_1 = arith.constant 0 : index
    %c0_2 = arith.constant 0 : index
    %1 = vector.load %arg3[%c0_1, %c0_2] : memref<32x72xf32, #tpu.memory_space<vmem>>, vector<32x72xf32>
    %cst = arith.constant dense<0.000000e+00> : vector<128x72xf32>
    %2 = tpu.matmul %0, %1, %cst {dimension_numbers = #tpu.dot_dimension_numbers<[1], [0], [0], [1], [0, 0, 1, 1], [], []>} : vector<128x32xf32>, vector<32x72xf32>, vector<128x72xf32> -> vector<128x72xf32>
    %c0_3 = arith.constant 0 : index
    %c0_4 = arith.constant 0 : index
    %3 = vector.load %arg4[%c0_3, %c0_4] : memref<1x72xf32, #tpu.memory_space<vmem>>, vector<1x72xf32>
    %4 = vector.broadcast %3 : vector<1x72xf32> to vector<128x72xf32>
    %5 = arith.addf %2, %4 : vector<128x72xf32>
    %6 = vector.extract_strided_slice %5 {offsets = [0, 0], sizes = [128, 64], strides = [1, 1]} : vector<128x72xf32> to vector<128x64xf32>
    %cst_5 = arith.constant 0.000000e+00 : f32
    %7 = vector.broadcast %cst_5 : f32 to vector<128x64xf32>
    %8 = arith.maximumf %6, %7 : vector<128x64xf32>
    %9 = vector.extract_strided_slice %5 {offsets = [0, 64], sizes = [128, 8], strides = [1, 1]} : vector<128x72xf32> to vector<128x8xf32>
    %c0_6 = arith.constant 0 : index
    %c0_7 = arith.constant 0 : index
    %10 = vector.load %arg5[%c0_6, %c0_7] : memref<64x32xf32, #tpu.memory_space<vmem>>, vector<64x32xf32>
    %cst_8 = arith.constant dense<0.000000e+00> : vector<128x32xf32>
    %11 = tpu.matmul %8, %10, %cst_8 {dimension_numbers = #tpu.dot_dimension_numbers<[1], [0], [0], [1], [0, 0, 1, 1], [], []>} : vector<128x64xf32>, vector<64x32xf32>, vector<128x32xf32> -> vector<128x32xf32>
    %c0_9 = arith.constant 0 : index
    %c0_10 = arith.constant 0 : index
    %12 = vector.load %arg6[%c0_9, %c0_10] : memref<1x32xf32, #tpu.memory_space<vmem>>, vector<1x32xf32>
    %13 = vector.broadcast %12 : vector<1x32xf32> to vector<128x32xf32>
    %14 = arith.addf %11, %13 : vector<128x32xf32>
    %cst_11 = arith.constant 0.000000e+00 : f32
    %15 = vector.broadcast %cst_11 : f32 to vector<128x32xf32>
    %16 = arith.maximumf %14, %15 : vector<128x32xf32>
    %c0_12 = arith.constant 0 : index
    %c0_13 = arith.constant 0 : index
    %17 = vector.load %arg7[%c0_12, %c0_13] : memref<32x8xf32, #tpu.memory_space<vmem>>, vector<32x8xf32>
    %cst_14 = arith.constant dense<0.000000e+00> : vector<128x8xf32>
    %18 = tpu.matmul %16, %17, %cst_14 {dimension_numbers = #tpu.dot_dimension_numbers<[1], [0], [0], [1], [0, 0, 1, 1], [], []>} : vector<128x32xf32>, vector<32x8xf32>, vector<128x8xf32> -> vector<128x8xf32>
    %c0_15 = arith.constant 0 : index
    %c0_16 = arith.constant 0 : index
    %19 = vector.load %arg8[%c0_15, %c0_16] : memref<1x8xf32, #tpu.memory_space<vmem>>, vector<1x8xf32>
    %20 = vector.broadcast %19 : vector<1x8xf32> to vector<128x8xf32>
    %21 = arith.addf %18, %20 : vector<128x8xf32>
    %22 = arith.addf %21, %9 : vector<128x8xf32>
    %c0_17 = arith.constant 0 : index
    %c0_18 = arith.constant 0 : index
    %23 = vector.load %arg10[%c0_17, %c0_18] : memref<128x8xf32, #tpu.memory_space<vmem>>, vector<128x8xf32>
    tpu.vector_store %arg10[%c0_17, %c0_18], %22 {strides = array<i32>} : memref<128x8xf32, #tpu.memory_space<vmem>>, vector<128x8xf32>,
    %c0_19 = arith.constant 0 : index
    %c0_20 = arith.constant 0 : index
    %24 = vector.load %arg2[%c0_19, %c0_20] : memref<128x1xi32, #tpu.memory_space<vmem>>, vector<128x1xi32>
    %25 = tpu.iota {dimensions = array<i32: 1>} : vector<128x8xi32>
    %26 = vector.broadcast %24 : vector<128x1xi32> to vector<128x8xi32>
    %27 = arith.cmpi eq, %25, %26 : vector<128x8xi32>
    %28 = arith.extui %27 : vector<128x8xi1> to vector<128x8xi32>
    %29 = arith.sitofp %28 : vector<128x8xi32> to vector<128x8xf32>
    %c1_i32 = arith.constant 1 : i32
    %30 = vector.broadcast %c1_i32 : i32 to vector<128x1xi32>
    %31 = arith.subi %24, %30 : vector<128x1xi32>
    %c0_i32 = arith.constant 0 : i32
    %32 = vector.broadcast %c0_i32 : i32 to vector<128x1xi32>
    %33 = arith.maxsi %31, %32 : vector<128x1xi32>
    %c1_i32_21 = arith.constant 1 : i32
    %34 = vector.broadcast %c1_i32_21 : i32 to vector<128x1xi32>
    %35 = arith.addi %24, %34 : vector<128x1xi32>
    %c7_i32 = arith.constant 7 : i32
    %36 = vector.broadcast %c7_i32 : i32 to vector<128x1xi32>
    %37 = arith.minsi %35, %36 : vector<128x1xi32>
    %38 = vector.broadcast %33 : vector<128x1xi32> to vector<128x8xi32>
    %39 = arith.cmpi eq, %25, %38 : vector<128x8xi32>
    %40 = arith.extui %39 : vector<128x8xi1> to vector<128x8xi32>
    %41 = arith.sitofp %40 : vector<128x8xi32> to vector<128x8xf32>
    %42 = arith.addf %29, %41 : vector<128x8xf32>
    %43 = vector.broadcast %37 : vector<128x1xi32> to vector<128x8xi32>
    %44 = arith.cmpi eq, %25, %43 : vector<128x8xi32>
    %45 = arith.extui %44 : vector<128x8xi1> to vector<128x8xi32>
    %46 = arith.sitofp %45 : vector<128x8xi32> to vector<128x8xf32>
    %47 = arith.addf %42, %46 : vector<128x8xf32>
    %48 = arith.mulf %47, %22 : vector<128x8xf32>
    %cst_22 = arith.constant dense<0.000000e+00> : vector<128xf32>
    %49 = vector.multi_reduction <add>, %48, %cst_22 [1] : vector<128x8xf32> to vector<128xf32>
    %50 = vector.shape_cast %49 : vector<128xf32> to vector<128x1xf32>
    %cst_23 = arith.constant 3.000000e+00 : f32
    %51 = vector.broadcast %cst_23 : f32 to vector<128x1xf32>
    %52 = arith.divf %50, %51 : vector<128x1xf32>
    %53 = arith.negf %52 : vector<128x1xf32>
    %54 = math.exp %53 : vector<128x1xf32>
    %cst_24 = arith.constant 1.000000e+00 : f32
    %55 = vector.broadcast %cst_24 : f32 to vector<128x1xf32>
    %56 = arith.addf %55, %54 : vector<128x1xf32>
    %57 = arith.divf %55, %56 : vector<128x1xf32>
    %c0_25 = arith.constant 0 : index
    %c0_26 = arith.constant 0 : index
    %58 = vector.load %arg9[%c0_25, %c0_26] : memref<128x1xf32, #tpu.memory_space<vmem>>, vector<128x1xf32>
    tpu.vector_store %arg9[%c0_25, %c0_26], %57 {strides = array<i32>} : memref<128x1xf32, #tpu.memory_space<vmem>>, vector<128x1xf32>,
    return
  }
  func.func @transform_0(%arg0: i32) -> (i32, i32) {
    %c0_i32 = arith.constant 0 : i32
    %c0_i32_0 = arith.constant 0 : i32
    return %arg0, %c0_i32 : i32, i32
  }
  func.func @transform_1(%arg0: i32) -> (i32, i32) {
    %c0_i32 = arith.constant 0 : i32
    %c0_i32_0 = arith.constant 0 : i32
    return %arg0, %c0_i32 : i32, i32
  }
  func.func @transform_2(%arg0: i32) -> (i32, i32) {
    %c0_i32 = arith.constant 0 : i32
    %c0_i32_0 = arith.constant 0 : i32
    %c0_i32_1 = arith.constant 0 : i32
    return %c0_i32, %c0_i32_0 : i32, i32
  }
  func.func @transform_3(%arg0: i32) -> (i32, i32) {
    %c0_i32 = arith.constant 0 : i32
    %c0_i32_0 = arith.constant 0 : i32
    %c0_i32_1 = arith.constant 0 : i32
    return %c0_i32, %c0_i32_0 : i32, i32
  }
  func.func @transform_4(%arg0: i32) -> (i32, i32) {
    %c0_i32 = arith.constant 0 : i32
    %c0_i32_0 = arith.constant 0 : i32
    %c0_i32_1 = arith.constant 0 : i32
    return %c0_i32, %c0_i32_0 : i32, i32
  }
  func.func @transform_5(%arg0: i32) -> (i32, i32) {
    %c0_i32 = arith.constant 0 : i32
    %c0_i32_0 = arith.constant 0 : i32
    %c0_i32_1 = arith.constant 0 : i32
    return %c0_i32, %c0_i32_0 : i32, i32
  }
  func.func @transform_6(%arg0: i32) -> (i32, i32) {
    %c0_i32 = arith.constant 0 : i32
    %c0_i32_0 = arith.constant 0 : i32
    %c0_i32_1 = arith.constant 0 : i32
    return %c0_i32, %c0_i32_0 : i32, i32
  }
  func.func @transform_7(%arg0: i32) -> (i32, i32) {
    %c0_i32 = arith.constant 0 : i32
    %c0_i32_0 = arith.constant 0 : i32
    %c0_i32_1 = arith.constant 0 : i32
    return %c0_i32, %c0_i32_0 : i32, i32
  }
  func.func @transform_8(%arg0: i32) -> (i32, i32) {
    %c0_i32 = arith.constant 0 : i32
    %c0_i32_0 = arith.constant 0 : i32
    return %arg0, %c0_i32 : i32, i32
  }
  func.func @transform_9(%arg0: i32) -> (i32, i32) {
    %c0_i32 = arith.constant 0 : i32
    %c0_i32_0 = arith.constant 0 : i32
    return %arg0, %c0_i32 : i32, i32
  }
}

</mosaic_0001>

<bundles_post_ra>
// kernel: tpu_custom_call.1
= control target key start
LH: loop header
LB: loop body
LE: loop exit
PB: predicated region body
PF: predicated region fallthrough
CT: control target
= control target key end

     0   :  { %s2353_s30 = smov 0   ;;  %s2961_s0 = inlined_call_operand.vmem [shape: f32[256,32], index: 0, kind: input, shape index: {}]   ;;  %s2962_s1 = inlined_call_operand.vmem [shape: s32[256,1], index: 1, kind: input, shape index: {}]   ;;  %s2963_s2 = inlined_call_operand.vmem [shape: f32[32,72], index: 2, kind: input, shape index: {}]   ;;  %s2964_s3 = inlined_call_operand.vmem [shape: f32[1,72], index: 3, kind: input, shape index: {}]   ;;  %s2965_s4 = inlined_call_operand.vmem [shape: f32[64,32], index: 4, kind: input, shape index: {}]   ;;  %s2966_s5 = inlined_call_operand.vmem [shape: f32[1,32], index: 5, kind: input, shape index: {}]   ;;  %s2967_s6 = inlined_call_operand.vmem [shape: f32[32,8], index: 6, kind: input, shape index: {}]   ;;  %s2968_s7 = inlined_call_operand.vmem [shape: f32[1,8], index: 7, kind: input, shape index: {}]   ;;  %s2969_s8 = inlined_call_operand.vmem [shape: f32[256,1], index: 8, kind: output, shape index: {0}]   ;;  %s2970_s9 = inlined_call_operand.vmem [shape: f32[256,8], index: 9, kind: output, shape index: {1}]  }
   0x1 LB: > { %s1865_s10 = sadd.s32 4294967295, %s2298_s30   ;;  %p1869_p0 = scmp.ge.s32.totalorder %s2298_s30, 1  ;;  %s2298_s30 = sphi %s2353_s30, %s20_s30  }
   0x2   : > { %p302_p1 = scmp.lt.s32.totalorder %s2298_s30, 3 }
   0x4   : > { %p303_p2 = pnand %p1869_p0, %p302_p1 }
   0x5   : > { %v388_v0 = vld [vmem:[%s2963_s2] sm:$0xff] (!%p303_p2)  ;;  %v389_v1 = vld [vmem:[%s2963_s2 + $0x8] sm:$0xff] (!%p303_p2)  ;;  %v390_v2 = vld [vmem:[%s2963_s2 + $0x10] sm:$0xff] (!%p303_p2)  ;;  %s1870_s17 = sshll.u32 (!%p303_p2), %s1865_s10, 4  ;;  %v2300_v5 = vmov (!%p303_p2), 0   ;;  %vm399_vm0 = vcmask (!%p303_p2), 261120  }
   0x6   : > { %306 = sbr.rel (%p303_p2) target bundleno = 876 (0x36c), region = 52  ;;  %v2179_v3 = vpack.c.bf16 (!%p303_p2), %v389_v1, %v388_v0  ;;  %v391_v4 = vld [vmem:[%s2963_s2 + $0x18] sm:$0xff] (!%p303_p2)  ;;  %p349_p3 = scmp.lt.s32.totalorder (!%p303_p2), %s1870_s17, 31  ;;  %2227 = vset.pattern.permute.xlu1 (!%p303_p2), %v2300_v5  ;;  %2226 = vset.pattern.permute.xlu0 (!%p303_p2), %v2300_v5  ;;  %v609_v7 = vld [vmem:[%s2965_s4] sm:$0xff] (!%p303_p2)  ;;  %v610_v8 = vld [vmem:[%s2965_s4 + $0x8] sm:$0xff] (!%p303_p2) }
   0x7   : > { %v2183_v6 = vpack.c.bf16 (!%p303_p2), %v391_v4, %v390_v2  ;;  %v2187_v9 = vpack.c.bf16 (!%p303_p2), %v610_v8, %v609_v7  ;;  %v611_v17 = vld [vmem:[%s2965_s4 + $0x10] sm:$0xff] (!%p303_p2)  ;;  %v612_v18 = vld [vmem:[%s2965_s4 + $0x18] sm:$0xff] (!%p303_p2)  ;;  %v613_v29 = vld [vmem:[%s2965_s4 + $0x20] sm:$0xff] (!%p303_p2)  ;;  %s2302_s26 = smov (!%p303_p2), 64  }
   0x8   : > { %2180 = vmatprep.subr.bf16.mxu0 (!%p303_p2), %v2179_v3  ;;  %2211 = vmatprep.subr.bf16.mxu1 (!%p303_p2), %v2179_v3  ;;  %v2191_v26 = vpack.c.bf16 (!%p303_p2), %v612_v18, %v611_v17  ;;  %v614_v32 = vld [vmem:[%s2965_s4 + $0x28] sm:$0xff] (!%p303_p2) }
   0x9   : > { %2182 = vmatpush3.bf16.msra.mxu0 (!%p303_p2), %v2179_v3  ;;  %2213 = vmatpush3.bf16.msra.mxu1 (!%p303_p2), %v2179_v3  ;;  %v2195_v37 = vpack.c.bf16 (!%p303_p2), %v614_v32, %v613_v29 }
   0xa   : > { %2184 = vmatprep.subr.bf16.mxu0 (!%p303_p2), %v2183_v6  ;;  %2212 = vmatprep.subr.bf16.mxu1 (!%p303_p2), %v2183_v6 }
   0xd   : > { %s2972_s17 = smov (!%p349_p3, %s1870_s17), 31  ;;  %2186 = vmatpush3.bf16.msra.mxu0 %v2183_v6  ;;  %2214 = vmatpush3.bf16.msra.mxu1 %v2183_v6 }
   0xe   : > { %s2379_s24 = sshll.u32 %s2972_s17, 3  ;;  %2188 = vmatprep.subr.bf16.mxu1 %v2187_v9 }
   0xf   : > { %s2385_s27 = scalar_lea.vmem %s2961_s0, %s2379_s24  ;;  %s2399_s10 = scalar_lea.vmem %s2962_s1, %s2379_s24 }
  0x10   : > { %v372_v10 = vld [vmem:[%s2385_s27] sm:$0xff]  ;;  %v373_v12 = vld [vmem:[%s2385_s27 + $0x8] sm:$0xff]  ;;  %v374_v14 = vld [vmem:[%s2385_s27 + $0x10] sm:$0xff]  ;;  %s2783_s21 = scalar_lea.vmem %s2970_s9, %s2379_s24  ;;  %s2924_s25 = scalar_lea.vmem %s2969_s8, %s2379_s24 }
  0x11   : > { %v380_v11 = vld [vmem:[%s2385_s27 + $0x40] sm:$0xff]  ;;  %v381_v13 = vld [vmem:[%s2385_s27 + $0x48] sm:$0xff]  ;;  %2083 = vmatprep.mubr.msk.f32.mxu0 %vm399_vm0, %v372_v10  ;;  %v382_v15 = vld [vmem:[%s2385_s27 + $0x50] sm:$0xff] }
  0x12   : > { %2095 = vmatprep.mubr.msk.f32.mxu1 %vm399_vm0, %v380_v11  ;;  %2084 = vmatmul.mubr.msk.f32.vlgmr.msra.gmra.mrb[0].mxu0 %vm399_vm0, %v373_v12  ;;  %v375_v16 = vld [vmem:[%s2385_s27 + $0x18] sm:$0xff]  ;;  %v2414_v20 = vld [vmem:[%s2399_s10 + $0x8] sm:$0xff]  ;;  %v2417_v21 = vld [vmem:[%s2399_s10] sm:$0xff] }
  0x13   : > { %2096 = vmatmul.mubr.msk.f32.vlgmr.msra.gmra.mrb[0].mxu1 %vm399_vm0, %v381_v13  ;;  %2086 = vmatprep.mubr.msk.f32.mxu0 %vm399_vm0, %v374_v14  ;;  %v383_v19 = vld [vmem:[%s2385_s27 + $0x58] sm:$0xff]  ;;  %v376_v22 = vld [vmem:[%s2385_s27 + $0x20] sm:$0xff]  ;;  %v2424_v24 = vld [vmem:[%s2399_s10 + $0x10] sm:$0xff]  ;;  %v1946_v46 = vadd.s32 4294967295, %v2414_v20  ;;  %v1945_v47 = vadd.s32 4294967295, %v2417_v21  ;;  %v1298_v14 = vadd.s32 1, %v2414_v20 }
  0x14   : > { %2098 = vmatprep.mubr.msk.f32.mxu1 %vm399_vm0, %v382_v15  ;;  %v384_v23 = vld [vmem:[%s2385_s27 + $0x60] sm:$0xff]  ;;  %1157 = vperm.xlu1 %2227, %v2414_v20   ;;  %v2427_v25 = vld [vmem:[%s2399_s10 + $0x18] sm:$0xff]  ;;  %v377_v27 = vld [vmem:[%s2385_s27 + $0x28] sm:$0xff]  ;;  %v1947_v51 = vadd.s32 4294967295, %v2424_v24  ;;  %v1297_v15 = vadd.s32 1, %v2417_v21 }
  0x15   : > { %1154 = vperm.xlu0 %2226, %v2417_v21   ;;  %2190 = vmatpush3.bf16.msra.mxu1 %v2187_v9  ;;  %v385_v28 = vld [vmem:[%s2385_s27 + $0x68] sm:$0xff]  ;;  %v378_v30 = vld [vmem:[%s2385_s27 + $0x30] sm:$0xff]  ;;  %v2446_v33 = vld [vmem:[%s2399_s10 + $0x20] sm:$0xff]  ;;  %vm1267_vm1 = vcmp.gt.s32.totalorder %v1946_v46, 0  ;;  %vm1265_vm2 = vcmp.gt.s32.totalorder %v1945_v47, 0  ;;  %v1948_v50 = vadd.s32 4294967295, %v2427_v25 }
  0x16   : > { %2087 = vmatmul.mubr.msk.f32.gmra.mrb[2].mxu0 %vm399_vm0, %v375_v16  ;;  %v386_v31 = vld [vmem:[%s2385_s27 + $0x70] sm:$0xff]  ;;  %v2449_v34 = vld [vmem:[%s2399_s10 + $0x28] sm:$0xff]  ;;  %2192 = vmatprep.subr.bf16.mxu1 %v2191_v26  ;;  %v379_v35 = vld [vmem:[%s2385_s27 + $0x38] sm:$0xff]  ;;  %v1268_v52 = vsel %vm1267_vm1, %v1946_v46, 0  ;;  %v1266_v53 = vsel %vm1265_vm2, %v1945_v47, 0  ;;  %vm1269_vm4 = vcmp.gt.s32.totalorder %v1947_v51, 0 }
  0x17   : > { %2099 = vmatmul.mubr.msk.f32.gmra.mrb[2].mxu1 %vm399_vm0, %v383_v19  ;;  %2089 = vmatprep.mubr.msk.f32.mxu0 %vm399_vm0, %v376_v22  ;;  %v387_v36 = vld [vmem:[%s2385_s27 + $0x78] sm:$0xff]  ;;  %v2460_v38 = vld [vmem:[%s2399_s10 + $0x30] sm:$0xff]  ;;  %v2470_v40 = vld [vmem:[%s2399_s10 + $0x40] sm:$0xff]  ;;  %vm1271_vm3 = vcmp.gt.s32.totalorder %v1948_v50, 0  ;;  %v1950_v54 = vadd.s32 4294967295, %v2449_v34  ;;  %v1949_v55 = vadd.s32 4294967295, %v2446_v33 }
  0x18   : > { %2101 = vmatprep.mubr.msk.f32.mxu1 %vm399_vm0, %v384_v23  ;;  %1160 = vperm.xlu1 %2227, %v2424_v24   ;;  %v2463_v39 = vld [vmem:[%s2399_s10 + $0x38] sm:$0xff]  ;;  %v2473_v41 = vld [vmem:[%s2399_s10 + $0x48] sm:$0xff]  ;;  %v2478_v42 = vld [vmem:[%s2399_s10 + $0x50] sm:$0xff]  ;;  %v1272_v56 = vsel %vm1271_vm3, %v1948_v50, 0  ;;  %v1270_v57 = vsel %vm1269_vm4, %v1947_v51, 0  ;;  %v1951_v59 = vadd.s32 4294967295, %v2460_v38 }
  0x19   : > { %1163 = vperm.xlu0 %2226, %v2427_v25   ;;  %2194 = vmatpush3.bf16.msra.mxu1 %v2191_v26  ;;  %v2481_v43 = vld [vmem:[%s2399_s10 + $0x58] sm:$0xff]  ;;  %v2486_v44 = vld [vmem:[%s2399_s10 + $0x60] sm:$0xff]  ;;  %v2489_v45 = vld [vmem:[%s2399_s10 + $0x68] sm:$0xff]  ;;  %vm1275_vm5 = vcmp.gt.s32.totalorder %v1950_v54, 0  ;;  %vm1273_vm6 = vcmp.gt.s32.totalorder %v1949_v55, 0  ;;  %v1952_v58 = vadd.s32 4294967295, %v2463_v39 }
  0x1a   : > { %2090 = vmatmul.mubr.msk.f32.gmra.mrb[4].mxu0 %vm399_vm0, %v377_v27  ;;  %2196 = vmatprep.subr.bf16.mxu1 %v2195_v37  ;;  %v2496_v48 = vld [vmem:[%s2399_s10 + $0x70] sm:$0xff]  ;;  %v2499_v49 = vld [vmem:[%s2399_s10 + $0x78] sm:$0xff]  ;;  %v1276_v60 = vsel %vm1275_vm5, %v1950_v54, 0  ;;  %v1274_v61 = vsel %vm1273_vm6, %v1949_v55, 0  ;;  %vm1277_vm8 = vcmp.gt.s32.totalorder %v1951_v59, 0  ;;  %v1954_v62 = vadd.s32 4294967295, %v2473_v41 }
  0x1b   : > { %2102 = vmatmul.mubr.msk.f32.gmra.mrb[4].mxu1 %vm399_vm0, %v385_v28  ;;  %2092 = vmatprep.mubr.msk.f32.mxu0 %vm399_vm0, %v378_v30  ;;  %vm1279_vm7 = vcmp.gt.s32.totalorder %v1952_v58, 0  ;;  %v1953_v63 = vadd.s32 4294967295, %v2470_v40  ;;  %v1278_v1 = vsel %vm1277_vm8, %v1951_v59, 0  ;;  %v1956_v2 = vadd.s32 4294967295, %v2481_v43 }
  0x1c   : > { %2104 = vmatprep.mubr.msk.f32.mxu1 %vm399_vm0, %v386_v31  ;;  %1166 = vperm.xlu1 %2227, %v2446_v33   ;;  %v1280_v0 = vsel %vm1279_vm7, %v1952_v58, 0  ;;  %vm1283_vm9 = vcmp.gt.s32.totalorder %v1954_v62, 0  ;;  %v1955_v3 = vadd.s32 4294967295, %v2478_v42  ;;  %v1958_v6 = vadd.s32 4294967295, %v2489_v45 }
  0x1d   : > { %1169 = vperm.xlu0 %2226, %v2449_v34   ;;  %2198 = vmatpush3.bf16.msra.mxu1 %v2195_v37  ;;  %vm1281_vm10 = vcmp.gt.s32.totalorder %v1953_v63, 0  ;;  %v1284_v4 = vsel %vm1283_vm9, %v1954_v62, 0  ;;  %vm1287_vm11 = vcmp.gt.s32.totalorder %v1956_v2, 0  ;;  %v1957_v7 = vadd.s32 4294967295, %v2486_v44 }
  0x1e   : > { %2093 = vmatmul.mubr.msk.f32.gmra.mrb[6].mxu0 %vm399_vm0, %v379_v35  ;;  %v1282_v5 = vsel %vm1281_vm10, %v1953_v63, 0  ;;  %vm1285_vm12 = vcmp.gt.s32.totalorder %v1955_v3, 0  ;;  %v1288_v8 = vsel %vm1287_vm11, %v1956_v2, 0  ;;  %vm1291_vm13 = vcmp.gt.s32.totalorder %v1958_v6, 0 }
  0x1f   : > { %2105 = vmatmul.mubr.msk.f32.gmra.mrb[6].mxu1 %vm399_vm0, %v387_v36  ;;  %v1286_v9 = vsel %vm1285_vm12, %v1955_v3, 0  ;;  %vm1289_vm14 = vcmp.gt.s32.totalorder %v1957_v7, 0  ;;  %v1960_v10 = vadd.s32 4294967295, %v2499_v49  ;;  %v1959_v11 = vadd.s32 4294967295, %v2496_v48 }
  0x20   : > { %1172 = vperm.xlu1 %2227, %v2460_v38   ;;  %v1292_v12 = vsel %vm1291_vm13, %v1958_v6, 0  ;;  %v1290_v13 = vsel %vm1289_vm14, %v1957_v7, 0  ;;  %vm1315_vm2 = vcmp.lt.s32.totalorder %v1298_v14, 7  ;;  %vm1313_vm3 = vcmp.lt.s32.totalorder %v1297_v15, 7 }
  0x21   : > { %1175 = vperm.xlu0 %2226, %v2463_v39   ;;  %vm1295_vm15 = vcmp.gt.s32.totalorder %v1960_v10, 0  ;;  %vm1293_vm1 = vcmp.gt.s32.totalorder %v1959_v11, 0  ;;  %v1300_v18 = vadd.s32 1, %v2427_v25  ;;  %v1299_v19 = vadd.s32 1, %v2424_v24 }
  0x22   : > { %v1296_v16 = vsel %vm1295_vm15, %v1960_v10, 0  ;;  %v1294_v17 = vsel %vm1293_vm1, %v1959_v11, 0  ;;  %v1316_v22 = vsel %vm1315_vm2, %v1298_v14, 7  ;;  %v1314_v23 = vsel %vm1313_vm3, %v1297_v15, 7 }
  0x23   : > { %vm1319_vm4 = vcmp.lt.s32.totalorder %v1300_v18, 7  ;;  %vm1317_vm5 = vcmp.lt.s32.totalorder %v1299_v19, 7  ;;  %v1302_v20 = vadd.s32 1, %v2449_v34  ;;  %v1301_v21 = vadd.s32 1, %v2446_v33 }
  0x24   : > { %1178 = vperm.xlu1 %2227, %v2470_v40   ;;  %v1320_v26 = vsel %vm1319_vm4, %v1300_v18, 7  ;;  %v1318_v27 = vsel %vm1317_vm5, %v1299_v19, 7  ;;  %v1304_v25 = vadd.s32 1, %v2463_v39  ;;  %v1303_v24 = vadd.s32 1, %v2460_v38 }
  0x25   : > { %1181 = vperm.xlu0 %2226, %v2473_v41   ;;  %vm1323_vm6 = vcmp.lt.s32.totalorder %v1302_v20, 7  ;;  %vm1321_vm7 = vcmp.lt.s32.totalorder %v1301_v21, 7  ;;  %v1306_v30 = vadd.s32 1, %v2473_v41  ;;  %v1305_v31 = vadd.s32 1, %v2470_v40 }
  0x26   : > { %v1324_v28 = vsel %vm1323_vm6, %v1302_v20, 7  ;;  %v1322_v29 = vsel %vm1321_vm7, %v1301_v21, 7  ;;  %vm1327_vm8 = vcmp.lt.s32.totalorder %v1304_v25, 7  ;;  %vm1325_vm9 = vcmp.lt.s32.totalorder %v1303_v24, 7 }
  0x27   : > { %v1328_v32 = vsel %vm1327_vm8, %v1304_v25, 7  ;;  %v1326_v33 = vsel %vm1325_vm9, %v1303_v24, 7  ;;  %vm1331_vm10 = vcmp.lt.s32.totalorder %v1306_v30, 7  ;;  %vm1329_vm11 = vcmp.lt.s32.totalorder %v1305_v31, 7 }
  0x28   : > { %1184 = vperm.xlu1 %2227, %v2478_v42   ;;  %v1308_v34 = vadd.s32 1, %v2481_v43  ;;  %v1307_v35 = vadd.s32 1, %v2478_v42  ;;  %v1332_v36 = vsel %vm1331_vm10, %v1306_v30, 7  ;;  %v1330_v37 = vsel %vm1329_vm11, %v1305_v31, 7  ;;  %v616_v42 = vld [vmem:[%s2965_s4 + $0x38] sm:$0xff] }
  0x29   : > { %1187 = vperm.xlu0 %2226, %v2481_v43   ;;  %v1310_v38 = vadd.s32 1, %v2489_v45  ;;  %v1309_v39 = vadd.s32 1, %v2486_v44  ;;  %v615_v43 = vld [vmem:[%s2965_s4 + $0x30] sm:$0xff]  ;;  %v2301_v3 = vmov 0.0  }
  0x2a   : > { %vm1335_vm12 = vcmp.lt.s32.totalorder %v1308_v34, 7  ;;  %vm1333_vm13 = vcmp.lt.s32.totalorder %v1307_v35, 7  ;;  %v2199_v46 = vpack.c.bf16 %v616_v42, %v615_v43 }
  0x2b   : > { %v1336_v40 = vsel %vm1335_vm12, %v1308_v34, 7  ;;  %v1334_v41 = vsel %vm1333_vm13, %v1307_v35, 7  ;;  %vm1339_vm14 = vcmp.lt.s32.totalorder %v1310_v38, 7  ;;  %vm1337_vm15 = vcmp.lt.s32.totalorder %v1309_v39, 7 }
  0x2c   : > { %1190 = vperm.xlu1 %2227, %v2486_v44   ;;  %v1338_v47 = vsel %vm1337_vm15, %v1309_v39, 7  ;;  %2200 = vmatprep.subr.bf16.mxu1 %v2199_v46 }
  0x2d   : > { %1193 = vperm.xlu0 %2226, %v2489_v45   ;;  %v1340_v45 = vsel %vm1339_vm14, %v1310_v38, 7  ;;  %2202 = vmatpush3.bf16.msra.mxu1 %v2199_v46 }
  0x30   : > { %1196 = vperm.xlu1 %2227, %v2496_v48  }
  0x31   : > { %1199 = vperm.xlu0 %2226, %v2499_v49  }
  0x34   : > { %1346 = vperm.xlu1 %2227, %v1266_v53  }
  0x35   : > { %1349 = vperm.xlu0 %2226, %v1268_v52  }
  0x38   : > { %1352 = vperm.xlu1 %2227, %v1270_v57  }
  0x39   : > { %1355 = vperm.xlu0 %2226, %v1272_v56  }
  0x3c   : > { %1358 = vperm.xlu1 %2227, %v1274_v61   ;;  %v1151_v61 = vlaneseq }
  0x3d   : > { %1361 = vperm.xlu0 %2226, %v1276_v60  }
  0x40   : > { %1364 = vperm.xlu1 %2227, %v1278_v1  }
  0x41   : > { %1367 = vperm.xlu0 %2226, %v1280_v0   ;;  %v2545_v0 = vand.u32 127, %v1151_v61 }
  0x44   : > { %1370 = vperm.xlu1 %2227, %v1282_v5  }
  0x45   : > { %1373 = vperm.xlu0 %2226, %v1284_v4  }
  0x48   : > { %1376 = vperm.xlu1 %2227, %v1286_v9  }
  0x49   : > { %1379 = vperm.xlu0 %2226, %v1288_v8  }
  0x4c   : > { %1382 = vperm.xlu1 %2227, %v1290_v13  }
  0x4d   : > { %1385 = vperm.xlu0 %2226, %v1292_v12  }
  0x50   : > { %1388 = vperm.xlu1 %2227, %v1294_v17  }
  0x51   : > { %1391 = vperm.xlu0 %2226, %v1296_v16  }
  0x54   : > { %1458 = vperm.xlu1 %2227, %v1314_v23  }
  0x55   : > { %1461 = vperm.xlu0 %2226, %v1316_v22  }
  0x58   : > { %1464 = vperm.xlu1 %2227, %v1318_v27  }
  0x59   : > { %1467 = vperm.xlu0 %2226, %v1320_v26  }
  0x5c   : > { %1470 = vperm.xlu1 %2227, %v1322_v29  }
  0x5d   : > { %1473 = vperm.xlu0 %2226, %v1324_v28  }
  0x60   : > { %1476 = vperm.xlu1 %2227, %v1326_v33  }
  0x61   : > { %1479 = vperm.xlu0 %2226, %v1328_v32  }
  0x64   : > { %1482 = vperm.xlu1 %2227, %v1330_v37  }
  0x65   : > { %1485 = vperm.xlu0 %2226, %v1332_v36  }
  0x68   : > { %1488 = vperm.xlu1 %2227, %v1334_v41  }
  0x69   : > { %1491 = vperm.xlu0 %2226, %v1336_v40  }
  0x6c   : > { %1494 = vperm.xlu1 %2227, %v1338_v47  }
  0x6d   : > { %1497 = vperm.xlu0 %2226, %v1340_v45  }
  0x93   : > { %v1158_v44 = vpop.permute.xlu1 %1157 }
  0x94   : > { %v1155_v50 = vpop.permute.xlu0 %1154  ;;  %vm1202_vm1 = vcmp.eq.s32.totalorder %v2545_v0, %v1158_v44 }
  0x95   : > { %vm1201_vm2 = vcmp.eq.s32.totalorder %v2545_v0, %v1155_v50  ;;  %v1930_v4 = vsel %vm1202_vm1, 1.0, %v2301_v3 }
  0x96   : > { %v1929_v5 = vsel %vm1201_vm2, 1.0, %v2301_v3 }
  0x97   : > { %v1161_v51 = vpop.permute.xlu1 %1160 }
  0x98   : > { %v1164_v52 = vpop.permute.xlu0 %1163  ;;  %vm1203_vm3 = vcmp.eq.s32.totalorder %v2545_v0, %v1161_v51 }
  0x99   : > { %vm1204_vm4 = vcmp.eq.s32.totalorder %v2545_v0, %v1164_v52  ;;  %v1931_v12 = vsel %vm1203_vm3, 1.0, %v2301_v3 }
  0x9a   : > { %v1932_v13 = vsel %vm1204_vm4, 1.0, %v2301_v3 }
  0x9b   : > { %v1167_v53 = vpop.permute.xlu1 %1166 }
  0x9c   : > { %v1170_v54 = vpop.permute.xlu0 %1169  ;;  %vm1205_vm7 = vcmp.eq.s32.totalorder %v2545_v0, %v1167_v53 }
  0x9d   : > { %vm1206_vm8 = vcmp.eq.s32.totalorder %v2545_v0, %v1170_v54  ;;  %v1933_v22 = vsel %vm1205_vm7, 1.0, %v2301_v3 }
  0x9e   : > { %v1934_v23 = vsel %vm1206_vm8, 1.0, %v2301_v3 }
  0x9f   : > { %v1173_v55 = vpop.permute.xlu1 %1172 }
  0xa0   : > { %v1176_v56 = vpop.permute.xlu0 %1175  ;;  %vm1207_vm11 = vcmp.eq.s32.totalorder %v2545_v0, %v1173_v55 }
  0xa1   : > { %vm1208_vm12 = vcmp.eq.s32.totalorder %v2545_v0, %v1176_v56  ;;  %v1935_v28 = vsel %vm1207_vm11, 1.0, %v2301_v3 }
  0xa2   : > { %v1936_v29 = vsel %vm1208_vm12, 1.0, %v2301_v3 }
  0xa3   : > { %v1179_v57 = vpop.permute.xlu1 %1178 }
  0xa4   : > { %v1182_v58 = vpop.permute.xlu0 %1181  ;;  %vm1209_vm15 = vcmp.eq.s32.totalorder %v2545_v0, %v1179_v57 }
  0xa5   : > { %vm1210_vm1 = vcmp.eq.s32.totalorder %v2545_v0, %v1182_v58  ;;  %v1937_v36 = vsel %vm1209_vm15, 1.0, %v2301_v3 }
  0xa6   : > { %v1938_v37 = vsel %vm1210_vm1, 1.0, %v2301_v3 }
  0xa7   : > { %v2537_v59 = vpop.permute.xlu1 %1184 }
  0xa8   : > { %v2539_v60 = vpop.permute.xlu0 %1187  ;;  %vm1211_vm4 = vcmp.eq.s32.totalorder %v2545_v0, %v2537_v59 }
  0xa9   : > { %v1939_v46 = vsel %vm1211_vm4, 1.0, %v2301_v3 }
  0xab   : > { %v2541_v62 = vpop.permute.xlu1 %1190 }
  0xac   : > { %v2543_v63 = vpop.permute.xlu0 %1193  ;;  %vm1213_vm8 = vcmp.eq.s32.totalorder %v2545_v0, %v2541_v62 }
  0xad   : > { %v1941_v54 = vsel %vm1213_vm8, 1.0, %v2301_v3 }
  0xaf   : > { %v2547_v1 = vpop.permute.xlu1 %1196 }
  0xb0   : > { %v2549_v2 = vpop.permute.xlu0 %1199  ;;  %vm1215_vm12 = vcmp.eq.s32.totalorder %v2545_v0, %v2547_v1 }
  0xb1   : > { %v1943_v62 = vsel %vm1215_vm12, 1.0, %v2301_v3 }
  0xb3   : > { %v1347_v7 = vpop.permute.xlu1 %1346 }
  0xb4   : > { %v1350_v6 = vpop.permute.xlu0 %1349  ;;  %vm1393_vm6 = vcmp.eq.s32.totalorder %v2545_v0, %v1347_v7 }
  0xb5   : > { %vm1394_vm5 = vcmp.eq.s32.totalorder %v2545_v0, %v1350_v6  ;;  %v1961_v9 = vsel %vm1393_vm6, 1.0, %v2301_v3 }
  0xb6   : > { %v1962_v8 = vsel %vm1394_vm5, 1.0, %v2301_v3  ;;  %v2563_v11 = vadd.f32 %v1961_v9, %v1929_v5  ;;  %vm1212_vm5 = vcmp.eq.s32.totalorder %v2545_v0, %v2539_v60 }
  0xb7   : > { %v2561_v10 = vadd.f32 %v1962_v8, %v1930_v4  ;;  %v1353_v15 = vpop.permute.xlu1 %1352  ;;  %v1940_v45 = vsel %vm1212_vm5, 1.0, %v2301_v3  ;;  %v2656_v8 = vld [vmem:[%s2964_s3] ss:$0 sm:$0xff] }
  0xb8   : > { %v1356_v14 = vpop.permute.xlu0 %1355  ;;  %vm1395_vm10 = vcmp.eq.s32.totalorder %v2545_v0, %v1353_v15 }
  0xb9   : > { %vm1396_vm9 = vcmp.eq.s32.totalorder %v2545_v0, %v1356_v14  ;;  %v1963_v17 = vsel %vm1395_vm10, 1.0, %v2301_v3 }
  0xba   : > { %v1964_v16 = vsel %vm1396_vm9, 1.0, %v2301_v3  ;;  %v2575_v19 = vadd.f32 %v1963_v17, %v1931_v12  ;;  %vm1214_vm9 = vcmp.eq.s32.totalorder %v2545_v0, %v2543_v63 }
  0xbb   : > { %v2573_v18 = vadd.f32 %v1964_v16, %v1932_v13  ;;  %v1359_v21 = vpop.permute.xlu1 %1358  ;;  %v1942_v55 = vsel %vm1214_vm9, 1.0, %v2301_v3  ;;  %vm1118_vm9 = vcmask 64512  }
  0xbc   : > { %v1362_v20 = vpop.permute.xlu0 %1361  ;;  %vm1397_vm14 = vcmp.eq.s32.totalorder %v2545_v0, %v1359_v21 }
  0xbd   : > { %vm1398_vm13 = vcmp.eq.s32.totalorder %v2545_v0, %v1362_v20  ;;  %v1965_v27 = vsel %vm1397_vm14, 1.0, %v2301_v3 }
  0xbe   : > { %v1966_v26 = vsel %vm1398_vm13, 1.0, %v2301_v3  ;;  %v2587_v24 = vadd.f32 %v1965_v27, %v1933_v22  ;;  %vm1216_vm13 = vcmp.eq.s32.totalorder %v2545_v0, %v2549_v2 }
  0xbf   : > { %v2585_v25 = vadd.f32 %v1966_v26, %v1934_v23  ;;  %v1365_v31 = vpop.permute.xlu1 %1364  ;;  %v1944_v63 = vsel %vm1216_vm13, 1.0, %v2301_v3 }
  0xc0   : > { %v1368_v30 = vpop.permute.xlu0 %1367  ;;  %vm1399_vm3 = vcmp.eq.s32.totalorder %v2545_v0, %v1365_v31 }
  0xc1   : > { %vm1400_vm2 = vcmp.eq.s32.totalorder %v2545_v0, %v1368_v30  ;;  %v1967_v33 = vsel %vm1399_vm3, 1.0, %v2301_v3  ;;  %vm624_vm3 = vcmask 523264  }
  0xc2   : > { %v1968_v32 = vsel %vm1400_vm2, 1.0, %v2301_v3  ;;  %v2599_v35 = vadd.f32 %v1967_v33, %v1935_v28 }
  0xc3   : > { %v2597_v34 = vadd.f32 %v1968_v32, %v1936_v29  ;;  %v1371_v39 = vpop.permute.xlu1 %1370 }
  0xc4   : > { %v1374_v38 = vpop.permute.xlu0 %1373  ;;  %vm1401_vm7 = vcmp.eq.s32.totalorder %v2545_v0, %v1371_v39 }
  0xc5   : > { %vm1402_vm6 = vcmp.eq.s32.totalorder %v2545_v0, %v1374_v38  ;;  %v1969_v41 = vsel %vm1401_vm7, 1.0, %v2301_v3 }
  0xc6   : > { %v1970_v40 = vsel %vm1402_vm6, 1.0, %v2301_v3  ;;  %v2613_v42 = vadd.f32 %v1969_v41, %v1937_v36 }
  0xc7   : > { %v2611_v43 = vadd.f32 %v1970_v40, %v1938_v37  ;;  %v1377_v44 = vpop.permute.xlu1 %1376 }
  0xc8   : > { %v1380_v47 = vpop.permute.xlu0 %1379  ;;  %vm1403_vm11 = vcmp.eq.s32.totalorder %v2545_v0, %v1377_v44 }
  0xc9   : > { %vm1404_vm10 = vcmp.eq.s32.totalorder %v2545_v0, %v1380_v47  ;;  %v1971_v51 = vsel %vm1403_vm11, 1.0, %v2301_v3 }
  0xca   : > { %v1972_v50 = vsel %vm1404_vm10, 1.0, %v2301_v3  ;;  %v2627_v53 = vadd.f32 %v1971_v51, %v1939_v46 }
  0xcb   : > { %v2625_v52 = vadd.f32 %v1972_v50, %v1940_v45  ;;  %v1383_v57 = vpop.permute.xlu1 %1382 }
  0xcc   : > { %v1386_v56 = vpop.permute.xlu0 %1385  ;;  %vm1405_vm15 = vcmp.eq.s32.totalorder %v2545_v0, %v1383_v57 }
  0xcd   : > { %vm1406_vm14 = vcmp.eq.s32.totalorder %v2545_v0, %v1386_v56  ;;  %v1973_v59 = vsel %vm1405_vm15, 1.0, %v2301_v3 }
  0xce   : > { %v1974_v58 = vsel %vm1406_vm14, 1.0, %v2301_v3  ;;  %v2641_v61 = vadd.f32 %v1973_v59, %v1941_v54  ;;  %v834_v59 = vld [vmem:[%s2967_s6] sm:$0xff] }
  0xcf   : > { %v2639_v60 = vadd.f32 %v1974_v58, %v1942_v55  ;;  %v1389_v4 = vpop.permute.xlu1 %1388 }
  0xd0   : > { %v1392_v1 = vpop.permute.xlu0 %1391  ;;  %vm1407_vm2 = vcmp.eq.s32.totalorder %v2545_v0, %v1389_v4 }
  0xd1   : > { %vm1408_vm1 = vcmp.eq.s32.totalorder %v2545_v0, %v1392_v1  ;;  %v1975_v5 = vsel %vm1407_vm2, 1.0, %v2301_v3 }
  0xd2   : > { %v1976_v2 = vsel %vm1408_vm1, 1.0, %v2301_v3  ;;  %v2651_v7 = vadd.f32 %v1975_v5, %v1943_v62  ;;  %v835_v62 = vld [vmem:[%s2967_s6 + $0x8] sm:$0xff] }
  0xd3   : > { %v2649_v6 = vadd.f32 %v1976_v2, %v1944_v63  ;;  %v836_v63 = vld [vmem:[%s2967_s6 + $0x10] sm:$0xff]  ;;  %v2203_v4 = vpack.c.bf16 %v835_v62, %v834_v59  ;;  %v837_v2 = vld [vmem:[%s2967_s6 + $0x18] sm:$0xff] }
  0xd5   : > { %2204 = vmatprep.subr.bf16.mxu0 %v2203_v4 }
  0xd6   : > { %2206 = vmatpush3.bf16.msra.mxu0 %v2203_v4 }
  0xe5   : > { %v2085_v9 = vpop.f32.mrb[0].mxu0 }
  0xe6   : > { %v2097_v12 = vpop.f32.mrb[0].mxu1  ;;  %v520_v13 = vadd.f32 %v2085_v9, %v2656_v8  ;;  %v514_v15 = vpop.f32.mrb[1].mxu0 }
  0xe7   : > { %v2660_v14 = vadd.f32 %v2097_v12, %v2656_v8  ;;  %v554_v16 = vpop.f32.mrb[1].mxu1  ;;  %v515_v17 = vadd.f32 %v2656_v8, %v514_v15  ;;  %v2207_v12 = vpack.c.bf16 %v837_v2, %v836_v63 }
  0xe8   : > { %1056 = vrot.lane.b32.xlu0 %v520_v13, %s2302_s26  ;;  %v594_v28 = vmax.f32 %v520_v13, 0.0  ;;  %v555_v30 = vadd.f32 %v2656_v8, %v554_v16 }
  0xe9   : > { %1072 = vrot.lane.b32.xlu1 %v2660_v14, %s2302_s26  ;;  %v593_v22 = vmax.f32 %v515_v17, 0.0  ;;  %v2088_v23 = vpop.f32.mrb[2].mxu0  ;;  %v602_v15 = vmax.f32 %v2660_v14, 0.0  ;;  %2208 = vmatprep.subr.bf16.mxu0 %v2207_v12 }
  0xea   : > { %v2100_v20 = vpop.f32.mrb[2].mxu1  ;;  %v530_v21 = vadd.f32 %v2088_v23, %v2656_v8  ;;  %v524_v26 = vpop.f32.mrb[3].mxu0  ;;  %v601_v58 = vmax.f32 %v555_v30, 0.0  ;;  %v1312_v23 = vadd.s32 1, %v2499_v49  ;;  %2210 = vmatpush3.bf16.msra.mxu0 %v2207_v12 }
  0xeb   : > { %v564_v27 = vpop.f32.mrb[3].mxu1  ;;  %v525_v29 = vadd.f32 %v2656_v8, %v524_v26  ;;  %2123 = vmatprep.mubr.msk.f32.mxu1 %vm624_vm3, %v593_v22  ;;  %v570_v31 = vadd.f32 %v2100_v20, %v2656_v8  ;;  %v1311_v22 = vadd.s32 1, %v2496_v48 }
  0xec   : > { %1054 = vrot.lane.b32.xlu0 %v515_v17, %s2302_s26  ;;  %2124 = vmatmul.mubr.msk.f32.vlgmr.msra.gmra.mrb[8].mxu1 %vm624_vm3, %v594_v28  ;;  %v596_v39 = vmax.f32 %v530_v21, 0.0  ;;  %v565_v46 = vadd.f32 %v2656_v8, %v564_v27  ;;  %vm1343_vm5 = vcmp.lt.s32.totalorder %v1312_v23, 7  ;;  %v1895_v27 = vld [vmem:[%s2966_s5] ss:$0 sm:$0xff] }
  0xed   : > { %1060 = vrot.lane.b32.xlu1 %v530_v21, %s2302_s26  ;;  %v595_v32 = vmax.f32 %v525_v29, 0.0  ;;  %v2091_v33 = vpop.f32.mrb[4].mxu0  ;;  %v604_v20 = vmax.f32 %v570_v31, 0.0  ;;  %vm1341_vm4 = vcmp.lt.s32.totalorder %v1311_v22, 7  ;;  %v1344_v49 = vsel %vm1343_vm5, %v1312_v23, 7 }
  0xee   : > { %v2103_v36 = vpop.f32.mrb[4].mxu1  ;;  %v534_v37 = vpop.f32.mrb[5].mxu0  ;;  %v540_v40 = vadd.f32 %v2091_v33, %v2656_v8  ;;  %v603_v13 = vmax.f32 %v565_v46, 0.0  ;;  %v1342_v48 = vsel %vm1341_vm4, %v1311_v22, 7 }
  0xef   : > { %v574_v38 = vpop.f32.mrb[5].mxu1  ;;  %v535_v41 = vadd.f32 %v2656_v8, %v534_v37  ;;  %2126 = vmatprep.mubr.msk.f32.mxu1 %vm624_vm3, %v595_v32  ;;  %v580_v5 = vadd.f32 %v2103_v36, %v2656_v8 }
  0xf0   : > { %1070 = vrot.lane.b32.xlu0 %v555_v30, %s2302_s26  ;;  %2127 = vmatmul.mubr.msk.f32.gmra.mrb[10].mxu1 %vm624_vm3, %v596_v39  ;;  %v598_v54 = vmax.f32 %v540_v40, 0.0  ;;  %v575_v9 = vadd.f32 %v2656_v8, %v574_v38 }
  0xf1   : > { %1076 = vrot.lane.b32.xlu1 %v570_v31, %s2302_s26  ;;  %v597_v45 = vmax.f32 %v535_v41, 0.0  ;;  %v2094_v47 = vpop.f32.mrb[6].mxu0  ;;  %v606_v26 = vmax.f32 %v580_v5, 0.0 }
  0xf2   : > { %v2106_v44 = vpop.f32.mrb[6].mxu1  ;;  %v544_v50 = vpop.f32.mrb[7].mxu0  ;;  %v550_v55 = vadd.f32 %v2094_v47, %v2656_v8  ;;  %v605_v16 = vmax.f32 %v575_v9, 0.0 }
  0xf3   : > { %v584_v51 = vpop.f32.mrb[7].mxu1  ;;  %v545_v56 = vadd.f32 %v2656_v8, %v544_v50  ;;  %2129 = vmatprep.mubr.msk.f32.mxu1 %vm624_vm3, %v597_v45  ;;  %v590_v14 = vadd.f32 %v2106_v44, %v2656_v8 }
  0xf4   : > { %1074 = vrot.lane.b32.xlu0 %v565_v46, %s2302_s26  ;;  %2130 = vmatmul.mubr.msk.f32.gmra.mrb[12].mxu1 %vm624_vm3, %v598_v54  ;;  %v600_v1 = vmax.f32 %v550_v55, 0.0  ;;  %v585_v17 = vadd.f32 %v2656_v8, %v584_v51 }
  0xf5   : > { %1058 = vrot.lane.b32.xlu1 %v525_v29, %s2302_s26  ;;  %v599_v57 = vmax.f32 %v545_v56, 0.0  ;;  %v608_v8 = vmax.f32 %v590_v14, 0.0 }
  0xf6   : > { %v607_v21 = vmax.f32 %v585_v17, 0.0 }
  0xf7   : > { %2132 = vmatprep.mubr.msk.f32.mxu1 %vm624_vm3, %v599_v57 }
  0xf8   : > { %1062 = vrot.lane.b32.xlu0 %v535_v41, %s2302_s26  ;;  %2133 = vmatmul.mubr.msk.f32.gmra.mrb[14].mxu1 %vm624_vm3, %v600_v1 }
  0xf9   : > { %1064 = vrot.lane.b32.xlu1 %v540_v40, %s2302_s26  ;;  %2135 = vmatprep.mubr.msk.f32.mxu1 %vm624_vm3, %v601_v58 }
  0xfc   : > { %1078 = vrot.lane.b32.xlu0 %v575_v9, %s2302_s26  ;;  %2136 = vmatmul.mubr.msk.f32.gmra.mrb[16].mxu1 %vm624_vm3, %v602_v15 }
  0xfd   : > { %1080 = vrot.lane.b32.xlu1 %v580_v5, %s2302_s26  ;;  %2138 = vmatprep.mubr.msk.f32.mxu1 %vm624_vm3, %v603_v13 }
 0x100   : > { %1066 = vrot.lane.b32.xlu0 %v545_v56, %s2302_s26  ;;  %2139 = vmatmul.mubr.msk.f32.gmra.mrb[18].mxu1 %vm624_vm3, %v604_v20 }
 0x101   : > { %1068 = vrot.lane.b32.xlu1 %v550_v55, %s2302_s26  ;;  %2141 = vmatprep.mubr.msk.f32.mxu1 %vm624_vm3, %v605_v16 }
 0x104   : > { %1082 = vrot.lane.b32.xlu0 %v585_v17, %s2302_s26  ;;  %2142 = vmatmul.mubr.msk.f32.gmra.mrb[20].mxu1 %vm624_vm3, %v606_v26 }
 0x105   : > { %1084 = vrot.lane.b32.xlu1 %v590_v14, %s2302_s26  ;;  %2144 = vmatprep.mubr.msk.f32.mxu1 %vm624_vm3, %v607_v21 }
 0x108   : > { %1503 = vperm.xlu0 %2226, %v1344_v49   ;;  %2145 = vmatmul.mubr.msk.f32.gmra.mrb[22].mxu1 %vm624_vm3, %v608_v8 }
 0x109   : > { %1500 = vperm.xlu1 %2227, %v1342_v48  }
 0x1bf   : > { %v2125_v28 = vpop.f32.mrb[8].mxu1 }
 0x1c0   : > { %v745_v29 = vadd.f32 %v2125_v28, %v1895_v27  ;;  %v739_v30 = vpop.f32.mrb[9].mxu1 }
 0x1c1   : > { %v740_v31 = vadd.f32 %v1895_v27, %v739_v30 }
 0x1c2   : > { %v819_v36 = vmax.f32 %v745_v29, 0.0 }
 0x1c3   : > { %v818_v32 = vmax.f32 %v740_v31, 0.0  ;;  %v2128_v33 = vpop.f32.mrb[10].mxu1  ;;  %v1462_v31 = vpop.permute.xlu0 %1461 }
 0x1c4   : > { %v755_v37 = vadd.f32 %v2128_v33, %v1895_v27  ;;  %v749_v38 = vpop.f32.mrb[11].mxu1 }
 0x1c5   : > { %v750_v39 = vadd.f32 %v1895_v27, %v749_v38  ;;  %2155 = vmatprep.mubr.msk.f32.mxu0 %vm399_vm0, %v818_v32  ;;  %v1459_v32 = vpop.permute.xlu1 %1458 }
 0x1c6   : > { %2156 = vmatmul.mubr.msk.f32.vlgmr.msra.gmra.mrb[8].mxu0 %vm399_vm0, %v819_v36  ;;  %v821_v46 = vmax.f32 %v755_v37, 0.0  ;;  %vm1505_vm6 = vcmp.eq.s32.totalorder %v2545_v0, %v1459_v32 }
 0x1c7   : > { %v820_v40 = vmax.f32 %v750_v39, 0.0  ;;  %v2131_v41 = vpop.f32.mrb[12].mxu1  ;;  %v1468_v33 = vpop.permute.xlu0 %1467 }
 0x1c8   : > { %v765_v45 = vadd.f32 %v2131_v41, %v1895_v27  ;;  %v759_v47 = vpop.f32.mrb[13].mxu1  ;;  %vm1508_vm7 = vcmp.eq.s32.totalorder %v2545_v0, %v1468_v33 }
 0x1c9   : > { %v760_v44 = vadd.f32 %v1895_v27, %v759_v47  ;;  %2158 = vmatprep.mubr.msk.f32.mxu0 %vm399_vm0, %v820_v40  ;;  %v1465_v36 = vpop.permute.xlu1 %1464 }
 0x1ca   : > { %2159 = vmatmul.mubr.msk.f32.gmra.mrb[10].mxu0 %vm399_vm0, %v821_v46  ;;  %v823_v54 = vmax.f32 %v765_v45, 0.0  ;;  %vm1507_vm8 = vcmp.eq.s32.totalorder %v2545_v0, %v1465_v36 }
 0x1cb   : > { %v822_v50 = vmax.f32 %v760_v44, 0.0  ;;  %v2134_v51 = vpop.f32.mrb[14].mxu1  ;;  %v1474_v37 = vpop.permute.xlu0 %1473 }
 0x1cc   : > { %v775_v55 = vadd.f32 %v2134_v51, %v1895_v27  ;;  %v769_v56 = vpop.f32.mrb[15].mxu1  ;;  %vm1510_vm10 = vcmp.eq.s32.totalorder %v2545_v0, %v1474_v37 }
 0x1cd   : > { %v770_v57 = vadd.f32 %v1895_v27, %v769_v56  ;;  %2161 = vmatprep.mubr.msk.f32.mxu0 %vm399_vm0, %v822_v50  ;;  %v1471_v38 = vpop.permute.xlu1 %1470  ;;  %v1982_v32 = vsel %vm1510_vm10, 1.0, %v2301_v3 }
 0x1ce   : > { %2162 = vmatmul.mubr.msk.f32.gmra.mrb[12].mxu0 %vm399_vm0, %v823_v54  ;;  %v825_v62 = vmax.f32 %v775_v55, 0.0  ;;  %vm1509_vm11 = vcmp.eq.s32.totalorder %v2545_v0, %v1471_v38 }
 0x1cf   : > { %v824_v58 = vmax.f32 %v770_v57, 0.0  ;;  %v2137_v59 = vpop.f32.mrb[16].mxu1  ;;  %v2743_v39 = vpop.permute.xlu0 %1479  ;;  %v1981_v38 = vsel %vm1509_vm11, 1.0, %v2301_v3 }
 0x1d0   : > { %v785_v63 = vadd.f32 %v2137_v59, %v1895_v27  ;;  %v779_v1 = vpop.f32.mrb[17].mxu1  ;;  %vm1512_vm12 = vcmp.eq.s32.totalorder %v2545_v0, %v2743_v39 }
 0x1d1   : > { %v780_v4 = vadd.f32 %v1895_v27, %v779_v1  ;;  %2164 = vmatprep.mubr.msk.f32.mxu0 %vm399_vm0, %v824_v58  ;;  %v2745_v40 = vpop.permute.xlu1 %1476 }
 0x1d2   : > { %2165 = vmatmul.mubr.msk.f32.gmra.mrb[14].mxu0 %vm399_vm0, %v825_v62  ;;  %v827_v9 = vmax.f32 %v785_v63, 0.0  ;;  %v2772_v62 = vld [vmem:[%s2968_s7] ss:$0 sm:$0xff]  ;;  %vm1511_vm13 = vcmp.eq.s32.totalorder %v2545_v0, %v2745_v40 }
 0x1d3   : > { %v826_v2 = vmax.f32 %v780_v4, 0.0  ;;  %v2140_v5 = vpop.f32.mrb[18].mxu1 }
 0x1d4   : > { %v795_v12 = vadd.f32 %v2140_v5, %v1895_v27  ;;  %v789_v13 = vpop.f32.mrb[19].mxu1 }
 0x1d5   : > { %v790_v15 = vadd.f32 %v1895_v27, %v789_v13  ;;  %2167 = vmatprep.mubr.msk.f32.mxu0 %vm399_vm0, %v826_v2  ;;  %v2749_v41 = vpop.permute.xlu1 %1482  ;;  %v1977_v2 = vsel %vm1505_vm6, 1.0, %v2301_v3  ;;  %vm1746_vm6 = vcmask 7168  }
 0x1d6   : > { %2168 = vmatmul.mubr.msk.f32.gmra.mrb[16].mxu0 %vm399_vm0, %v827_v9  ;;  %v829_v22 = vmax.f32 %v795_v12, 0.0  ;;  %vm1513_vm15 = vcmp.eq.s32.totalorder %v2545_v0, %v2749_v41 }
 0x1d7   : > { %v828_v16 = vmax.f32 %v790_v15, 0.0  ;;  %v2143_v17 = vpop.f32.mrb[20].mxu1 }
 0x1d8   : > { %v805_v23 = vadd.f32 %v2143_v17, %v1895_v27  ;;  %v799_v20 = vpop.f32.mrb[21].mxu1  ;;  %v1553_v17 = vadd.f32 %v1977_v2, %v2563_v11  ;;  %v1984_v2 = vsel %vm1512_vm12, 1.0, %v2301_v3 }
 0x1d9   : > { %v800_v14 = vadd.f32 %v1895_v27, %v799_v20  ;;  %2170 = vmatprep.mubr.msk.f32.mxu0 %vm399_vm0, %v828_v16  ;;  %v2753_v45 = vpop.permute.xlu1 %1488 }
 0x1da   : > { %2171 = vmatmul.mubr.msk.f32.gmra.mrb[18].mxu0 %vm399_vm0, %v829_v22  ;;  %v831_v48 = vmax.f32 %v805_v23, 0.0  ;;  %v1980_v22 = vsel %vm1508_vm7, 1.0, %v2301_v3  ;;  %vm1515_vm2 = vcmp.eq.s32.totalorder %v2545_v0, %v2753_v45 }
 0x1db   : > { %v830_v21 = vmax.f32 %v800_v14, 0.0  ;;  %v2146_v26 = vpop.f32.mrb[22].mxu1  ;;  %v1979_v14 = vsel %vm1507_vm8, 1.0, %v2301_v3 }
 0x1dc   : > { %v815_v49 = vadd.f32 %v2146_v26, %v1895_v27  ;;  %v809_v8 = vpop.f32.mrb[23].mxu1 }
 0x1dd   : > { %v810_v28 = vadd.f32 %v1895_v27, %v809_v8  ;;  %2173 = vmatprep.mubr.msk.f32.mxu0 %vm399_vm0, %v830_v21  ;;  %v2747_v27 = vpop.permute.xlu0 %1485  ;;  %v2757_v44 = vpop.permute.xlu1 %1494  ;;  %v1556_v8 = vadd.f32 %v1980_v22, %v2573_v18  ;;  %v1560_v22 = vadd.f32 %v1984_v2, %v2597_v34 }
 0x1de   : > { %2174 = vmatmul.mubr.msk.f32.gmra.mrb[20].mxu0 %vm399_vm0, %v831_v48  ;;  %v833_v30 = vmax.f32 %v815_v49, 0.0  ;;  %vm1514_vm14 = vcmp.eq.s32.totalorder %v2545_v0, %v2747_v27  ;;  %vm1517_vm4 = vcmp.eq.s32.totalorder %v2545_v0, %v2757_v44 }
 0x1df   : > { %v832_v29 = vmax.f32 %v810_v28, 0.0 }
 0x1e1   : > { %2176 = vmatprep.mubr.msk.f32.mxu0 %vm399_vm0, %v832_v29  ;;  %v2751_v46 = vpop.permute.xlu0 %1491  ;;  %v2759_v51 = vpop.permute.xlu1 %1072 }
 0x1e2   : > { %2177 = vmatmul.mubr.msk.f32.gmra.mrb[22].mxu0 %vm399_vm0, %v833_v30  ;;  %vm1506_vm0 = vcmp.eq.s32.totalorder %v2545_v0, %v1462_v31  ;;  %v1555_v31 = vadd.f32 %v1979_v14, %v2575_v19  ;;  %vm1516_vm1 = vcmp.eq.s32.totalorder %v2545_v0, %v2751_v46 }
 0x1e3   : > { %v1978_v63 = vsel %vm1506_vm0, 1.0, %v2301_v3  ;;  %v1988_v45 = vsel %vm1516_vm1, 1.0, %v2301_v3 }
 0x1e4   : > { %v1554_v15 = vadd.f32 %v1978_v63, %v2561_v10 }
 0x1e5   : > { %v2755_v47 = vpop.permute.xlu0 %1497  ;;  %v1061_v55 = vpop.permute.xlu1 %1060 }
 0x1e6   : > { %vm1518_vm3 = vcmp.eq.s32.totalorder %v2545_v0, %v2755_v47 }
 0x1e7   : > { %v1990_v44 = vsel %vm1518_vm3, 1.0, %v2301_v3 }
 0x1e9   : > { %v1057_v50 = vpop.permute.xlu0 %1056  ;;  %v2763_v57 = vpop.permute.xlu1 %1076 }
 0x1ed   : > { %v1055_v54 = vpop.permute.xlu0 %1054  ;;  %v1059_v59 = vpop.permute.xlu1 %1058 }
 0x1f1   : > { %v2761_v56 = vpop.permute.xlu0 %1070  ;;  %v1065_v5 = vpop.permute.xlu1 %1064 }
 0x1f5   : > { %v2765_v58 = vpop.permute.xlu0 %1074  ;;  %v2801_v28 = vpop.permute.xlu1 %1080 }
 0x1f9   : > { %v1063_v1 = vpop.permute.xlu0 %1062 }
 0x1fd   : > { %v2795_v10 = vpop.permute.xlu0 %1078 }
 0x299   : > { %v2157_v4 = vpop.f32.mrb[8].mxu0 }
 0x29a   : > { %v965_v9 = vadd.f32 %v2157_v4, %v2772_v62  ;;  %v959_v12 = vpop.f32.mrb[9].mxu0  ;;  %v1557_v4 = vadd.f32 %v1981_v38, %v2587_v24 }
 0x29b   : > { %v960_v13 = vadd.f32 %v2772_v62, %v959_v12 }
 0x29c   : > { %v1103_v16 = vadd.f32 %v1057_v50, %v965_v9  ;;  %v1067_v9 = vpop.permute.xlu0 %1066 }
 0x29d   : > { %v1102_v23 = vadd.f32 %v1055_v54, %v960_v13  ;;  %v2160_v20 = vpop.f32.mrb[10].mxu0 }
 0x29e   : > { %1120 = vst.msk [vmem:[%s2783_s21 + $0x8] sm:$0xff] %vm1118_vm9, %v1103_v16  ;;  %v975_v21 = vadd.f32 %v2160_v20, %v2772_v62  ;;  %v969_v26 = vpop.f32.mrb[11].mxu0  ;;  %v1570_v48 = vmul.f32 %v1554_v15, %v1103_v16  ;;  %v1983_v15 = vsel %vm1511_vm13, 1.0, %v2301_v3  ;;  %v1069_v16 = vpop.permute.xlu1 %1068 }
 0x29f   : > { %1119 = vst.msk [vmem:[%s2783_s21] sm:$0xff] %vm1118_vm9, %v1102_v23  ;;  %v970_v11 = vadd.f32 %v2772_v62, %v969_v26  ;;  %v1569_v49 = vmul.f32 %v1553_v17, %v1102_v23  ;;  %v1559_v14 = vadd.f32 %v1983_v15, %v2599_v35 }
 0x2a0   : > { %v1105_v29 = vadd.f32 %v1061_v55, %v975_v21  ;;  %v1588_v30 = vsel %vm1118_vm9, %v1570_v48, 0.0  ;;  %v1986_v21 = vsel %vm1514_vm14, 1.0, %v2301_v3  ;;  %v2850_v27 = vpop.permute.xlu0 %1082 }
 0x2a1   : > { %v1104_v33 = vadd.f32 %v1059_v59, %v970_v11  ;;  %1589 = vadd.xlane.f32.xlu0 %v1588_v30  ;;  %v2163_v36 = vpop.f32.mrb[12].mxu0  ;;  %v1585_v37 = vsel %vm1118_vm9, %v1569_v49, 0.0  ;;  %v1558_v59 = vadd.f32 %v1982_v32, %v2585_v25  ;;  %v1985_v11 = vsel %vm1513_vm15, 1.0, %v2301_v3 }
 0x2a2   : > { %1122 = vst.msk [vmem:[%s2783_s21 + $0x18] sm:$0xff] %vm1118_vm9, %v1105_v29  ;;  %v985_v18 = vadd.f32 %v2163_v36, %v2772_v62  ;;  %v979_v50 = vpop.f32.mrb[13].mxu0  ;;  %1586 = vadd.xlane.f32.xlu1 %v1585_v37  ;;  %v1572_v54 = vmul.f32 %v1556_v8, %v1105_v29  ;;  %v1562_v30 = vadd.f32 %v1986_v21, %v2611_v43  ;;  %v1987_v43 = vsel %vm1515_vm2, 1.0, %v2301_v3 }
 0x2a3   : > { %1121 = vst.msk [vmem:[%s2783_s21 + $0x10] sm:$0xff] %vm1118_vm9, %v1104_v33  ;;  %v980_v19 = vadd.f32 %v2772_v62, %v979_v50  ;;  %v1571_v55 = vmul.f32 %v1555_v31, %v1104_v33  ;;  %v1085_v31 = vpop.permute.xlu1 %1084  ;;  %v1561_v36 = vadd.f32 %v1985_v11, %v2613_v42 }
 0x2a4   : > { %v1107_v63 = vadd.f32 %v1065_v5, %v985_v18  ;;  %v1594_v39 = vsel %vm1118_vm9, %v1572_v54, 0.0  ;;  %v1504_v46 = vpop.permute.xlu0 %1503 }
 0x2a5   : > { %v1106_v12 = vadd.f32 %v1063_v1, %v980_v19  ;;  %v2166_v13 = vpop.f32.mrb[14].mxu0  ;;  %v1591_v40 = vsel %vm1118_vm9, %v1571_v55, 0.0  ;;  %v1564_v19 = vadd.f32 %v1988_v45, %v2625_v52  ;;  %v1989_v52 = vsel %vm1517_vm4, 1.0, %v2301_v3 }
 0x2a6   : > { %1124 = vst.msk [vmem:[%s2783_s21 + $0x28] sm:$0xff] %vm1118_vm9, %v1107_v63  ;;  %v995_v25 = vadd.f32 %v2166_v13, %v2772_v62  ;;  %v989_v5 = vpop.f32.mrb[15].mxu0  ;;  %1592 = vadd.xlane.f32.xlu0 %v1591_v40  ;;  %1595 = vadd.xlane.f32.xlu1 %v1594_v39  ;;  %v1574_v24 = vmul.f32 %v1558_v59, %v1107_v63 }
 0x2a7   : > { %1123 = vst.msk [vmem:[%s2783_s21 + $0x20] sm:$0xff] %vm1118_vm9, %v1106_v12  ;;  %v990_v1 = vadd.f32 %v2772_v62, %v989_v5  ;;  %v1573_v17 = vmul.f32 %v1557_v4, %v1106_v12  ;;  %v1501_v55 = vpop.permute.xlu1 %1500  ;;  %v1563_v39 = vadd.f32 %v1987_v43, %v2627_v53  ;;  %vm1520_vm5 = vcmp.eq.s32.totalorder %v2545_v0, %v1504_v46 }
 0x2a8   : > { %v1109_v23 = vadd.f32 %v1069_v16, %v995_v25  ;;  %v1600_v20 = vsel %vm1118_vm9, %v1574_v24, 0.0  ;;  %vm1519_vm0 = vcmp.eq.s32.totalorder %v2545_v0, %v1501_v55  ;;  %v1566_v13 = vadd.f32 %v1990_v44, %v2639_v60 }
 0x2a9   : > { %v1108_v26 = vadd.f32 %v1067_v9, %v990_v1  ;;  %v2169_v41 = vpop.f32.mrb[16].mxu0  ;;  %v1597_v48 = vsel %vm1118_vm9, %v1573_v17, 0.0  ;;  %v1565_v16 = vadd.f32 %v1989_v52, %v2641_v61  ;;  %v1992_v25 = vsel %vm1520_vm5, 1.0, %v2301_v3 }
 0x2aa   : > { %1126 = vst.msk [vmem:[%s2783_s21 + $0x38] sm:$0xff] %vm1118_vm9, %v1109_v23  ;;  %v1005_v34 = vadd.f32 %v2169_v41, %v2772_v62  ;;  %v999_v49 = vpop.f32.mrb[17].mxu0  ;;  %1598 = vadd.xlane.f32.xlu0 %v1597_v48  ;;  %1601 = vadd.xlane.f32.xlu1 %v1600_v20  ;;  %v1576_v35 = vmul.f32 %v1560_v22, %v1109_v23  ;;  %v1991_v1 = vsel %vm1519_vm0, 1.0, %v2301_v3 }
 0x2ab   : > { %1125 = vst.msk [vmem:[%s2783_s21 + $0x30] sm:$0xff] %vm1118_vm9, %v1108_v26  ;;  %v1000_v8 = vadd.f32 %v2772_v62, %v999_v49  ;;  %v1575_v29 = vmul.f32 %v1559_v14, %v1108_v26  ;;  %v1568_v22 = vadd.f32 %v1992_v25, %v2649_v6  ;;  %v1567_v20 = vadd.f32 %v1991_v1, %v2651_v7 }
 0x2ac   : > { %v1111_v32 = vadd.f32 %v2759_v51, %v1005_v34  ;;  %v1606_v33 = vsel %vm1118_vm9, %v1576_v35, 0.0 }
 0x2ad   : > { %v1110_v37 = vadd.f32 %v2761_v56, %v1000_v8  ;;  %v2172_v38 = vpop.f32.mrb[18].mxu0  ;;  %v1603_v18 = vsel %vm1118_vm9, %v1575_v29, 0.0 }
 0x2ae   : > { %1128 = vst.msk [vmem:[%s2783_s21 + $0x48] sm:$0xff] %vm1118_vm9, %v1111_v32  ;;  %v1015_v51 = vadd.f32 %v2172_v38, %v2772_v62  ;;  %v1009_v42 = vpop.f32.mrb[19].mxu0  ;;  %1604 = vadd.xlane.f32.xlu0 %v1603_v18  ;;  %1607 = vadd.xlane.f32.xlu1 %v1606_v33  ;;  %v1578_v50 = vmul.f32 %v1562_v30, %v1111_v32 }
 0x2af   : > { %1127 = vst.msk [vmem:[%s2783_s21 + $0x40] sm:$0xff] %vm1118_vm9, %v1110_v37  ;;  %v1010_v56 = vadd.f32 %v2772_v62, %v1009_v42  ;;  %v1577_v54 = vmul.f32 %v1561_v36, %v1110_v37 }
 0x2b0   : > { %v1113_v59 = vadd.f32 %v2763_v57, %v1015_v51  ;;  %v1612_v63 = vsel %vm1118_vm9, %v1578_v50, 0.0 }
 0x2b1   : > { %v1112_v4 = vadd.f32 %v2765_v58, %v1010_v56  ;;  %v2175_v2 = vpop.f32.mrb[20].mxu0  ;;  %v1609_v9 = vsel %vm1118_vm9, %v1577_v54, 0.0 }
 0x2b2   : > { %1130 = vst.msk [vmem:[%s2783_s21 + $0x58] sm:$0xff] %vm1118_vm9, %v1113_v59  ;;  %v1025_v57 = vadd.f32 %v2175_v2, %v2772_v62  ;;  %v1019_v12 = vpop.f32.mrb[21].mxu0  ;;  %1610 = vadd.xlane.f32.xlu0 %v1609_v9  ;;  %1613 = vadd.xlane.f32.xlu1 %v1612_v63  ;;  %v1580_v53 = vmul.f32 %v1564_v19, %v1113_v59 }
 0x2b3   : > { %1129 = vst.msk [vmem:[%s2783_s21 + $0x50] sm:$0xff] %vm1118_vm9, %v1112_v4  ;;  %v1020_v47 = vadd.f32 %v2772_v62, %v1019_v12  ;;  %v1579_v58 = vmul.f32 %v1563_v39, %v1112_v4 }
 0x2b4   : > { %v1115_v40 = vadd.f32 %v2801_v28, %v1025_v57  ;;  %v1618_v15 = vsel %vm1118_vm9, %v1580_v53, 0.0 }
 0x2b5   : > { %v1114_v5 = vadd.f32 %v2795_v10, %v1020_v47  ;;  %v2178_v24 = vpop.f32.mrb[22].mxu0  ;;  %v1615_v0 = vsel %vm1118_vm9, %v1579_v58, 0.0 }
 0x2b6   : > { %1132 = vst.msk [vmem:[%s2783_s21 + $0x68] sm:$0xff] %vm1118_vm9, %v1115_v40  ;;  %v1035_v60 = vadd.f32 %v2178_v24, %v2772_v62  ;;  %v1029_v17 = vpop.f32.mrb[23].mxu0  ;;  %1616 = vadd.xlane.f32.xlu0 %v1615_v0  ;;  %1619 = vadd.xlane.f32.xlu1 %v1618_v15  ;;  %v1582_v28 = vmul.f32 %v1566_v13, %v1115_v40 }
 0x2b7   : > { %1131 = vst.msk [vmem:[%s2783_s21 + $0x60] sm:$0xff] %vm1118_vm9, %v1114_v5  ;;  %v1030_v61 = vadd.f32 %v2772_v62, %v1029_v17  ;;  %v1581_v10 = vmul.f32 %v1565_v16, %v1114_v5 }
 0x2b8   : > { %v1117_v23 = vadd.f32 %v1085_v31, %v1035_v60  ;;  %v1624_v3 = vsel %vm1118_vm9, %v1582_v28, 0.0 }
 0x2b9   : > { %v1116_v14 = vadd.f32 %v2850_v27, %v1030_v61  ;;  %v1621_v21 = vsel %vm1118_vm9, %v1581_v10, 0.0 }
 0x2ba   : > { %1134 = vst.msk [vmem:[%s2783_s21 + $0x78] sm:$0xff] %vm1118_vm9, %v1117_v23  ;;  %1622 = vadd.xlane.f32.xlu0 %v1621_v21  ;;  %1625 = vadd.xlane.f32.xlu1 %v1624_v3  ;;  %v1584_v26 = vmul.f32 %v1568_v22, %v1117_v23 }
 0x2bb   : > { %1133 = vst.msk [vmem:[%s2783_s21 + $0x70] sm:$0xff] %vm1118_vm9, %v1116_v14  ;;  %v1583_v62 = vmul.f32 %v1567_v20, %v1116_v14 }
 0x2bc   : > { %v1630_v41 = vsel %vm1118_vm9, %v1584_v26, 0.0 }
 0x2bd   : > { %v1627_v6 = vsel %vm1118_vm9, %v1583_v62, 0.0 }
 0x2be   : > { %1628 = vadd.xlane.f32.xlu0 %v1627_v6  ;;  %1631 = vadd.xlane.f32.xlu1 %v1630_v41 }
 0x32e   : > { %v1590_v48 = vpop.xlane.xlu0 %1589 }
 0x32f   : > { %v1994_v7 = vmul.f32 -0.33333334, %v1590_v48  ;;  %v1587_v11 = vpop.xlane.xlu1 %1586 }
 0x330   : > { %v1993_v34 = vmul.f32 -0.33333334, %v1587_v11 }
 0x331   : > { %v1668_v49 = vmul.f32 1.442695, %v1994_v7 }
 0x332   : > { %v1666_v35 = vmul.f32 1.442695, %v1993_v34 }
 0x333   : > { %2228 = vpow2.f32 %v1668_v49  ;;  %v1593_v27 = vpop.xlane.xlu0 %1592  ;;  %v1596_v8 = vpop.xlane.xlu1 %1595 }
 0x334   : > { %2230 = vpow2.f32 %v1666_v35  ;;  %v1995_v29 = vmul.f32 -0.33333334, %v1593_v27  ;;  %v1996_v30 = vmul.f32 -0.33333334, %v1596_v8 }
 0x336   : > { %v1670_v31 = vmul.f32 1.442695, %v1995_v29  ;;  %v1672_v32 = vmul.f32 1.442695, %v1996_v30 }
 0x337   : > { %v1599_v33 = vpop.xlane.xlu0 %1598  ;;  %v1602_v36 = vpop.xlane.xlu1 %1601 }
 0x338   : > { %2232 = vpow2.f32 %v1670_v31  ;;  %v1997_v45 = vmul.f32 -0.33333334, %v1599_v33  ;;  %v1998_v37 = vmul.f32 -0.33333334, %v1602_v36 }
 0x339   : > { %2234 = vpow2.f32 %v1672_v32 }
 0x33a   : > { %v1674_v38 = vmul.f32 1.442695, %v1997_v45  ;;  %v1676_v18 = vmul.f32 1.442695, %v1998_v37 }
 0x33b   : > { %v1605_v43 = vpop.xlane.xlu0 %1604  ;;  %v1608_v51 = vpop.xlane.xlu1 %1607 }
 0x33c   : > { %2236 = vpow2.f32 %v1674_v38  ;;  %v1999_v42 = vmul.f32 -0.33333334, %v1605_v43  ;;  %v2000_v50 = vmul.f32 -0.33333334, %v1608_v51 }
 0x33d   : > { %v2229_v46 = vpop.eup %2228  ;;  %2238 = vpow2.f32 %v1676_v18 }
 0x33e   : > { %v2231_v56 = vpop.eup %2230  ;;  %v1699_v54 = vadd.f32 1.0, %v2229_v46  ;;  %v1678_v19 = vmul.f32 1.442695, %v1999_v42  ;;  %v1680_v59 = vmul.f32 1.442695, %v2000_v50 }
 0x33f   : > { %v1698_v55 = vadd.f32 1.0, %v2231_v56  ;;  %v1611_v63 = vpop.xlane.xlu0 %1610  ;;  %v1614_v39 = vpop.xlane.xlu1 %1613 }
 0x340   : > { %2240 = vrcp.f32 %v1699_v54  ;;  %v2001_v44 = vmul.f32 -0.33333334, %v1611_v63  ;;  %v2002_v4 = vmul.f32 -0.33333334, %v1614_v39 }
 0x341   : > { %2242 = vrcp.f32 %v1698_v55 }
 0x342   : > { %v2233_v2 = vpop.eup %2232  ;;  %2244 = vpow2.f32 %v1678_v19  ;;  %v1682_v9 = vmul.f32 1.442695, %v2001_v44  ;;  %v1684_v12 = vmul.f32 1.442695, %v2002_v4 }
 0x343   : > { %v2235_v52 = vpop.eup %2234  ;;  %v1700_v57 = vadd.f32 1.0, %v2233_v2  ;;  %2246 = vpow2.f32 %v1680_v59  ;;  %v1617_v53 = vpop.xlane.xlu0 %1616 }
 0x344   : > { %v1620_v47 = vpop.xlane.xlu1 %1619  ;;  %v1701_v58 = vadd.f32 1.0, %v2235_v52  ;;  %2248 = vpow2.f32 %v1682_v9  ;;  %v2003_v13 = vmul.f32 -0.33333334, %v1617_v53 }
 0x345   : > { %v2004_v40 = vmul.f32 -0.33333334, %v1620_v47  ;;  %2250 = vrcp.f32 %v1700_v57 }
 0x346   : > { %v2237_v15 = vpop.eup %2236  ;;  %2252 = vrcp.f32 %v1701_v58  ;;  %v1686_v16 = vmul.f32 1.442695, %v2003_v13 }
 0x347   : > { %v2239_v25 = vpop.eup %2238  ;;  %v1702_v5 = vadd.f32 1.0, %v2237_v15  ;;  %2254 = vpow2.f32 %v1684_v12  ;;  %v1688_v24 = vmul.f32 1.442695, %v2004_v40  ;;  %v1623_v0 = vpop.xlane.xlu0 %1622 }
 0x348   : > { %v1626_v1 = vpop.xlane.xlu1 %1625  ;;  %v1703_v60 = vadd.f32 1.0, %v2239_v25  ;;  %2256 = vpow2.f32 %v1686_v16  ;;  %v2005_v17 = vmul.f32 -0.33333334, %v1623_v0 }
 0x349   : > { %v2006_v28 = vmul.f32 -0.33333334, %v1626_v1  ;;  %2258 = vrcp.f32 %v1702_v5 }
 0x34a   : > { %v2241_v61 = vpop.eup %2240  ;;  %2260 = vrcp.f32 %v1703_v60  ;;  %v1690_v10 = vmul.f32 1.442695, %v2005_v17 }
 0x34b   : > { %v1692_v22 = vmul.f32 1.442695, %v2006_v28  ;;  %v2243_v23 = vpop.eup %2242  ;;  %1748 = vst.msk [vmem:[%s2924_s25 + $0x8] sm:$0xff] %vm1746_vm6, %v2241_v61  ;;  %2262 = vpow2.f32 %v1688_v24  ;;  %v1629_v3 = vpop.xlane.xlu0 %1628 }
 0x34c   : > { %v1632_v20 = vpop.xlane.xlu1 %1631  ;;  %v2245_v14 = vpop.eup %2244  ;;  %1747 = vst.msk [vmem:[%s2924_s25] sm:$0xff] %vm1746_vm6, %v2243_v23  ;;  %2264 = vpow2.f32 %v1690_v10  ;;  %v2007_v21 = vmul.f32 -0.33333334, %v1629_v3 }
 0x34d   : > { %v2008_v26 = vmul.f32 -0.33333334, %v1632_v20  ;;  %v2247_v62 = vpop.eup %2246  ;;  %v1704_v41 = vadd.f32 1.0, %v2245_v14  ;;  %2266 = vpow2.f32 %v1692_v22 }
 0x34e   : > { %v2249_v6 = vpop.eup %2248  ;;  %v1705_v48 = vadd.f32 1.0, %v2247_v62  ;;  %v1694_v7 = vmul.f32 1.442695, %v2007_v21 }
 0x34f   : > { %v2251_v11 = vpop.eup %2250  ;;  %2268 = vrcp.f32 %v1704_v41  ;;  %v1706_v34 = vadd.f32 1.0, %v2249_v6  ;;  %v1696_v49 = vmul.f32 1.442695, %v2008_v26 }
 0x350   : > { %v2253_v35 = vpop.eup %2252  ;;  %1749 = vst.msk [vmem:[%s2924_s25 + $0x10] sm:$0xff] %vm1746_vm6, %v2251_v11  ;;  %2270 = vrcp.f32 %v1705_v48 }
 0x351   : > { %v2255_v27 = vpop.eup %2254  ;;  %1750 = vst.msk [vmem:[%s2924_s25 + $0x18] sm:$0xff] %vm1746_vm6, %v2253_v35  ;;  %2272 = vrcp.f32 %v1706_v34 }
 0x352   : > { %v2257_v8 = vpop.eup %2256  ;;  %v1707_v29 = vadd.f32 1.0, %v2255_v27  ;;  %2274 = vpow2.f32 %v1694_v7 }
 0x353   : > { %v2259_v30 = vpop.eup %2258  ;;  %v1708_v31 = vadd.f32 1.0, %v2257_v8  ;;  %2276 = vpow2.f32 %v1696_v49 }
 0x354   : > { %v2261_v32 = vpop.eup %2260  ;;  %1751 = vst.msk [vmem:[%s2924_s25 + $0x20] sm:$0xff] %vm1746_vm6, %v2259_v30  ;;  %2278 = vrcp.f32 %v1707_v29 }
 0x355   : > { %v2263_v33 = vpop.eup %2262  ;;  %1752 = vst.msk [vmem:[%s2924_s25 + $0x28] sm:$0xff] %vm1746_vm6, %v2261_v32  ;;  %2280 = vrcp.f32 %v1708_v31 }
 0x356   : > { %v2265_v36 = vpop.eup %2264  ;;  %v1709_v45 = vadd.f32 1.0, %v2263_v33 }
 0x357   : > { %v2267_v37 = vpop.eup %2266  ;;  %v1710_v38 = vadd.f32 1.0, %v2265_v36 }
 0x358   : > { %2282 = vrcp.f32 %v1709_v45  ;;  %v1711_v18 = vadd.f32 1.0, %v2267_v37 }
 0x359   : > { %v2269_v43 = vpop.eup %2268  ;;  %2284 = vrcp.f32 %v1710_v38 }
 0x35a   : > { %v2271_v51 = vpop.eup %2270  ;;  %1753 = vst.msk [vmem:[%s2924_s25 + $0x30] sm:$0xff] %vm1746_vm6, %v2269_v43  ;;  %2286 = vrcp.f32 %v1711_v18 }
 0x35b   : > { %v2273_v42 = vpop.eup %2272  ;;  %1754 = vst.msk [vmem:[%s2924_s25 + $0x38] sm:$0xff] %vm1746_vm6, %v2271_v51 }
 0x35c   : > { %v2275_v50 = vpop.eup %2274  ;;  %1755 = vst.msk [vmem:[%s2924_s25 + $0x40] sm:$0xff] %vm1746_vm6, %v2273_v42 }
 0x35d   : > { %v2277_v46 = vpop.eup %2276  ;;  %v1712_v56 = vadd.f32 1.0, %v2275_v50 }
 0x35e   : > { %v2279_v54 = vpop.eup %2278  ;;  %v1713_v19 = vadd.f32 1.0, %v2277_v46 }
 0x35f   : > { %v2281_v55 = vpop.eup %2280  ;;  %1756 = vst.msk [vmem:[%s2924_s25 + $0x48] sm:$0xff] %vm1746_vm6, %v2279_v54  ;;  %2288 = vrcp.f32 %v1712_v56 }
 0x360   : > { %1757 = vst.msk [vmem:[%s2924_s25 + $0x50] sm:$0xff] %vm1746_vm6, %v2281_v55  ;;  %2290 = vrcp.f32 %v1713_v19 }
 0x362   : > { %v2283_v59 = vpop.eup %2282 }
 0x363   : > { %v2285_v63 = vpop.eup %2284  ;;  %1758 = vst.msk [vmem:[%s2924_s25 + $0x58] sm:$0xff] %vm1746_vm6, %v2283_v59 }
 0x364   : > { %v2287_v39 = vpop.eup %2286  ;;  %1759 = vst.msk [vmem:[%s2924_s25 + $0x60] sm:$0xff] %vm1746_vm6, %v2285_v63 }
 0x365   : > { %1760 = vst.msk [vmem:[%s2924_s25 + $0x68] sm:$0xff] %vm1746_vm6, %v2287_v39 }
 0x369   : > { %v2289_v44 = vpop.eup %2288 }
 0x36a   : > { %v2291_v4 = vpop.eup %2290  ;;  %1761 = vst.msk [vmem:[%s2924_s25 + $0x70] sm:$0xff] %vm1746_vm6, %v2289_v44 }
 0x36b   : > { %1762 = vst.msk [vmem:[%s2924_s25 + $0x78] sm:$0xff] %vm1746_vm6, %v2291_v4 }
 0x36c PF: > { %s20_s30 = sadd.s32 1, %s2298_s30  }
 0x36d   : > { %p17_p4 = scmp.ge.s32.totalorder %s20_s30, 4  }
 0x36f   :  { %19 = sbr.rel (!%p17_p4) target bundleno = 1 (0x1), region = 97 }

</bundles_post_ra>
